<compile_context>
chip_gen: v7x
topology: tpu7x:2x2x1
jax: 0.10.0
libtpu: 0.0.40
codegen_flags: <defaults>
</compile_context>

<pallas_src>
import math

import jax
import jax.numpy as jnp
from jax.experimental import pallas as pl
from jax.experimental.pallas import tpu as pltpu


# ----------------------------------------------------------------------------
# helpers
# ----------------------------------------------------------------------------
def _softplus(x):
    # numerically-stable softplus (matches torch.nn.Softplus default)
    return jnp.maximum(x, 0.0) + jnp.log1p(jnp.exp(-jnp.abs(x)))


def init_linear(key, din, dout):
    scale = 1.0 / math.sqrt(din)
    w = jax.random.uniform(key, (din, dout), jnp.float32, -scale, scale)
    b = jnp.zeros((1, dout), jnp.float32)
    return w, b


def build_params(key, n1, n2, n3, nblocks, final_dim):
    keys = iter(jax.random.split(key, 64))
    dims = [n1, n2, n3]
    ff_list = []
    for i in range(nblocks):
        for d in range(3):
            layers = [init_linear(next(keys), din, dout) for (din, dout) in dims[d][i]]
            ff_list.append(layers)
    blocks = []
    for i in range(nblocks):
        Fv = n1[i][-1][1]
        Fe = n2[i][-1][1]
        Fu = n3[i][-1][1]
        phi_e = init_linear(next(keys), Fv + Fe + Fu, Fe)   # input = [A@V, E, u]
        phi_v = init_linear(next(keys), Fe + Fv + Fu, Fv)   # input = [B@e', V, u]
        phi_u = init_linear(next(keys), Fe + Fv + Fu, Fu)   # input = [mean e', mean v', u]
        blocks.append((phi_e, phi_v, phi_u))
    out_scc = init_linear(next(keys), 2 * final_dim + 4, 1)
    return ff_list, blocks, out_scc


# ----------------------------------------------------------------------------
# slab packer: row-stacks 2-D arrays into one (R, width) slab; every entry
# starts at an 8-row-aligned offset so kernel slices are sublane aligned.
# Handles (slab_id, offset, rows, cols) are static Python ints baked into the
# kernel closure -> unpacking is free.
# ----------------------------------------------------------------------------
class _Packer:
    def __init__(self, dtype, slab_id):
        self.dtype = dtype
        self.slab_id = slab_id
        self.arrays = []
        self.offset = 0
        self.width = 0

    def add(self, arr):
        arr = jnp.asarray(arr).astype(self.dtype)
        r, c = arr.shape
        handle = (self.slab_id, self.offset, r, c)
        self.arrays.append(arr)
        self.width = max(self.width, c)
        self.offset += ((r + 7) // 8) * 8      # keep entries sublane aligned
        return handle

    def pack(self):
        rows = []
        for a in self.arrays:
            r, c = a.shape
            pad_r = ((r + 7) // 8) * 8 - r
            pad_c = self.width - c
            rows.append(jnp.pad(a, ((0, pad_r), (0, pad_c))))
        return jnp.concatenate(rows, axis=0)


# ----------------------------------------------------------------------------
# single fused Pallas kernel for the whole forward pass
# ----------------------------------------------------------------------------
def _make_kernel(plan, n_nodes, n_edges):
    bf16 = jnp.bfloat16
    inv_n = 1.0 / n_nodes
    inv_e = 1.0 / n_edges

    def kernel(w_ref, f_ref, out_ref):
        def rd(h):
            slab, off, r, c = h
            ref = w_ref if slab == 0 else f_ref
            return ref[off:off + r, 0:c]          # static slice -> cheap view load

        def linear_sp(x, wh, bh):
            y = jnp.dot(x.astype(bf16), rd(wh),
                        preferred_element_type=jnp.float32) + rd(bh)
            return _softplus(y)

        dat = plan["data"]
        V = rd(dat["V0"]).astype(jnp.float32)      # (N, Fn)
        Eb = rd(dat["E0"]).astype(jnp.float32)     # (E, Fe_in)
        A = rd(dat["A"])                           # (E, N)  bf16
        B = rd(dat["B"])                           # (N, E)  bf16
        u = jnp.zeros((1, 4), jnp.float32)         # gbl_ftr = torch.zeros((1, 4))

        for blk in plan["blocks"]:
            # --- ff stacks (node / edge / global) ---
            for wh, bh in blk["node_ff"]:
                V = linear_sp(V, wh, bh)
            for wh, bh in blk["edge_ff"]:
                Eb = linear_sp(Eb, wh, bh)
            for wh, bh in blk["gbl_ff"]:
                u = linear_sp(u, wh, bh)

            wev, wee, weu, be = blk["phi_e"]
            wve, wvv, wvu, bv = blk["phi_v"]
            wue, wuv, wuu, bu = blk["phi_u"]

            Vb = V.astype(bf16)
            Ebb = Eb.astype(bf16)
            ub = u.astype(bf16)

            # edge update: softplus([A@V, E, u] @ We + be) as split matmuls
            gath = jnp.dot(A, Vb, preferred_element_type=jnp.float32)        # (E, Fv)
            e_new = _softplus(
                jnp.dot(gath.astype(bf16), rd(wev), preferred_element_type=jnp.float32)
                + jnp.dot(Ebb, rd(wee), preferred_element_type=jnp.float32)
                + jnp.dot(ub, rd(weu), preferred_element_type=jnp.float32)
                + rd(be))

            # node update: softplus([B@e', V, u] @ Wv + bv)
            agg = jnp.dot(B, e_new.astype(bf16),
                          preferred_element_type=jnp.float32)                # (N, Fe)
            v_new = _softplus(
                jnp.dot(agg.astype(bf16), rd(wve), preferred_element_type=jnp.float32)
                + jnp.dot(Vb, rd(wvv), preferred_element_type=jnp.float32)
                + jnp.dot(ub, rd(wvu), preferred_element_type=jnp.float32)
                + rd(bv))

            # global update: column means as XLU sublane reductions (off the MXU)
            mean_e = jnp.sum(e_new, axis=0, keepdims=True) * inv_e           # (1, Fe)
            mean_v = jnp.sum(v_new, axis=0, keepdims=True) * inv_n           # (1, Fv)
            u_new = _softplus(
                jnp.dot(mean_e.astype(bf16), rd(wue), preferred_element_type=jnp.float32)
                + jnp.dot(mean_v.astype(bf16), rd(wuv), preferred_element_type=jnp.float32)
                + jnp.dot(ub, rd(wuu), preferred_element_type=jnp.float32)
                + rd(bu))

            # fused residual adds (data vreg-resident, f32)
            V = V + v_new
            Eb = Eb + e_new
            u = u + u_new

        # --- readout, lane-dense (1, C):
        #     out[0,c] = V[c0,:]@ow0 + V[c1,:]@ow1 + ED[c,:]@owd + ob
        #     computed as column projections + broadcast-mul + sublane reduce.
        ow0, ow1, owd_row, ob = plan["readout"]
        Vb = V.astype(bf16)
        g0 = jnp.dot(Vb, rd(ow0), preferred_element_type=jnp.float32)        # (N, 1)
        g1 = jnp.dot(Vb, rd(ow1), preferred_element_type=jnp.float32)        # (N, 1)
        sel0T = rd(dat["sel0T"])                                             # (N, C) f32
        sel1T = rd(dat["sel1T"])                                             # (N, C) f32
        t0 = jnp.sum(g0 * sel0T, axis=0, keepdims=True)                      # (1, C)
        t1 = jnp.sum(g1 * sel1T, axis=0, keepdims=True)                      # (1, C)
        td = jnp.dot(rd(owd_row), rd(dat["EDT"]),
                     preferred_element_type=jnp.float32)                     # (1, C)
        out_ref[...] = t0 + t1 + td + rd(ob)

    return kernel


# ----------------------------------------------------------------------------
# forward pass (mirrors megnet.forward) — one pallas_call, whole thing jitted
# ----------------------------------------------------------------------------
@jax.jit
def megnet_forward(params, data, combinations, edge_data):
    ff_list, blocks, out_scc = params
    nblocks = len(blocks)

    node_ftr = jnp.asarray(data['node_ftr'], jnp.float32)    # (1, N, Fn)
    edge_ftr = jnp.asarray(data['edge_ftr'], jnp.float32)    # (1, E, Fe_in)
    A4B = jnp.asarray(data['atom4bond'], jnp.float32)        # (E, N)
    B4A = jnp.asarray(data['bond4atom'], jnp.float32)        # (N, E)
    ED = jnp.asarray(edge_data, jnp.float32)[0]              # (C, 4)

    V0 = node_ftr[0]
    E0 = edge_ftr[0]
    N, En, C = V0.shape[0], E0.shape[0], ED.shape[0]

    comb = combinations[0].astype(jnp.int32)                 # (C, 2)
    sel0T = jax.nn.one_hot(comb[:, 0], N, dtype=jnp.float32).T   # (N, C)
    sel1T = jax.nn.one_hot(comb[:, 1], N, dtype=jnp.float32).T   # (N, C)

    # two slabs: bf16 for MXU operands, f32 for biases / selection masks
    w_pack = _Packer(jnp.bfloat16, 0)
    f_pack = _Packer(jnp.float32, 1)

    data_h = dict(
        V0=w_pack.add(V0), E0=w_pack.add(E0),
        A=w_pack.add(A4B), B=w_pack.add(B4A),
        EDT=w_pack.add(ED.T),
        sel0T=f_pack.add(sel0T), sel1T=f_pack.add(sel1T),
    )

    flops = 0
    trans = 0
    blocks_plan = []
    rows_per_stack = (N, En, 1)
    stack_names = ("node_ff", "edge_ff", "gbl_ff")
    for i in range(nblocks):
        bp = {}
        for d in range(3):
            stack = []
            for (w, b) in ff_list[3 * i + d]:
                stack.append((w_pack.add(w), f_pack.add(b)))
                din, dout = w.shape
                flops += 2 * rows_per_stack[d] * din * dout
                trans += 2 * rows_per_stack[d] * dout
            bp[stack_names[d]] = stack
        (we, be), (wv, bv), (wu, bu) = blocks[i]
        Fv = ff_list[3 * i][-1][0].shape[1]
        Fe = ff_list[3 * i + 1][-1][0].shape[1]
        Fu = ff_list[3 * i + 2][-1][0].shape[1]
        # split each block weight along its concat axis (done once, outside kernel)
        bp["phi_e"] = (w_pack.add(we[:Fv]), w_pack.add(we[Fv:Fv + Fe]),
                       w_pack.add(we[Fv + Fe:]), f_pack.add(be))
        bp["phi_v"] = (w_pack.add(wv[:Fe]), w_pack.add(wv[Fe:Fe + Fv]),
                       w_pack.add(wv[Fe + Fv:]), f_pack.add(bv))
        bp["phi_u"] = (w_pack.add(wu[:Fe]), w_pack.add(wu[Fe:Fe + Fv]),
                       w_pack.add(wu[Fe + Fv:]), f_pack.add(bu))
        flops += 2 * (En * N * Fv + En * (Fv + Fe + Fu) * Fe)   # edge update
        flops += 2 * (N * En * Fe + N * (Fe + Fv + Fu) * Fv)    # node update
        flops += 2 * (Fe + Fv + Fu) * Fu                        # global update
        trans += 2 * (En * Fe + N * Fv + Fu)
        blocks_plan.append(bp)

    ow, ob = out_scc
    Ffin = ff_list[3 * (nblocks - 1)][-1][0].shape[1]
    readout = (w_pack.add(ow[:Ffin]), w_pack.add(ow[Ffin:2 * Ffin]),
               w_pack.add(ow[2 * Ffin:].T), f_pack.add(ob))
    flops += 2 * (2 * N * Ffin + 4 * C + 2 * N * C)

    plan = dict(data=data_h, blocks=blocks_plan, readout=readout)
    slab_w = w_pack.pack()      # bf16 (Rw, Ww)
    slab_f = f_pack.pack()      # f32  (Rf, Wf)

    kernel = _make_kernel(plan, N, En)
    cost = pl.CostEstimate(
        flops=int(flops),
        transcendentals=int(trans),
        bytes_accessed=int(slab_w.size * 2 + slab_f.size * 4 + C * 4),
    )

    out = pl.pallas_call(
        kernel,
        out_shape=jax.ShapeDtypeStruct((1, C), jnp.float32),
        in_specs=[pl.BlockSpec(memory_space=pltpu.MemorySpace.VMEM),
                  pl.BlockSpec(memory_space=pltpu.MemorySpace.VMEM)],
        out_specs=pl.BlockSpec(memory_space=pltpu.MemorySpace.VMEM),
        compiler_params=pltpu.CompilerParams(vmem_limit_bytes=32 * 1024 * 1024),
        cost_estimate=cost,
    )(slab_w, slab_f)
    # reference returns squeeze(output_scc(ftr), -1) -> shape (1, C)
    return out


# ----------------------------------------------------------------------------
# main
# ----------------------------------------------------------------------------
if __name__ == "__main__":
    key = jax.random.PRNGKey(0)
    N, E, C = 8, 16, 8             # atoms, bonds, atom-pair combinations
    nblocks = 2
    n1 = [[(16, 32)], [(32, 32)]]  # node ff dims per block
    n2 = [[(16, 32)], [(32, 32)]]  # edge ff dims per block
    n3 = [[(4, 32)], [(32, 32)]]   # global ff dims per block
    final_dim = 32

    kp, k1, k2, k3, k4 = jax.random.split(key, 5)
    params = build_params(kp, n1, n2, n3, nblocks, final_dim)

    node_ftr = jax.random.normal(k1, (1, N, 16), jnp.float32)
    edge_ftr = jax.random.normal(k2, (1, E, 16), jnp.float32)

    # dense float incidence-style matrices (cast to .float() in the reference,
    # so we treat them as gather / mean-aggregation matrices).
    src = jnp.arange(E) % N
    dst = (jnp.arange(E) + 1) % N
    atom4bond = (jax.nn.one_hot(src, N) + jax.nn.one_hot(dst, N)) * 0.5       # (E, N)
    inc = (jax.nn.one_hot(src, N) + jax.nn.one_hot(dst, N)).T                  # (N, E)
    bond4atom = inc / jnp.maximum(inc.sum(axis=1, keepdims=True), 1.0)         # (N, E)

    combinations = jax.random.randint(k3, (1, C, 2), 0, N)
    edge_data = jax.random.normal(k4, (1, C, 4), jnp.float32)

    data = dict(node_ftr=node_ftr, edge_ftr=edge_ftr,
                atom4bond=atom4bond, bond4atom=bond4atom)

    out = megnet_forward(params, data, combinations, edge_data)
    out = jax.block_until_ready(out)
    assert out.shape == (1, C) and out.dtype == jnp.float32
    assert bool(jnp.all(jnp.isfinite(out)))
    print("KERNEL_OK")
</pallas_src>

<mosaic_0001>
module attributes {stable_mosaic.version = 11 : i64} {
  func.func @kernel(%arg0: memref<840x32xbf16, #tpu.memory_space<vmem>>, %arg1: memref<120x32xf32, #tpu.memory_space<vmem>>, %arg2: memref<1x8xf32, #tpu.memory_space<vmem>>) attributes {dimension_semantics = [], scalar_prefetch = 0 : i64, scratch_operands = 0 : i64, tpu.core_type = #tpu.core_type<tc>} {
    %c0 = arith.constant 0 : index
    %c0_0 = arith.constant 0 : index
    %0 = vector.load %arg0[%c0, %c0_0] : memref<840x32xbf16, #tpu.memory_space<vmem>>, vector<8x16xbf16>
    %1 = arith.extf %0 : vector<8x16xbf16> to vector<8x16xf32>
    %c8 = arith.constant 8 : index
    %c0_1 = arith.constant 0 : index
    %2 = vector.load %arg0[%c8, %c0_1] : memref<840x32xbf16, #tpu.memory_space<vmem>>, vector<16x16xbf16>
    %3 = arith.extf %2 : vector<16x16xbf16> to vector<16x16xf32>
    %c24 = arith.constant 24 : index
    %c0_2 = arith.constant 0 : index
    %4 = vector.load %arg0[%c24, %c0_2] : memref<840x32xbf16, #tpu.memory_space<vmem>>, vector<16x8xbf16>
    %c40 = arith.constant 40 : index
    %c0_3 = arith.constant 0 : index
    %5 = vector.load %arg0[%c40, %c0_3] : memref<840x32xbf16, #tpu.memory_space<vmem>>, vector<8x16xbf16>
    %cst = arith.constant 0.000000e+00 : f32
    %6 = vector.broadcast %cst : f32 to vector<1x4xf32>
    %7 = arith.truncf %1 : vector<8x16xf32> to vector<8x16xbf16>
    %c56 = arith.constant 56 : index
    %c0_4 = arith.constant 0 : index
    %8 = vector.load %arg0[%c56, %c0_4] : memref<840x32xbf16, #tpu.memory_space<vmem>>, vector<16x32xbf16>
    %cst_5 = arith.constant dense<0.000000e+00> : vector<8x32xf32>
    %9 = tpu.matmul %7, %8, %cst_5 {dimension_numbers = #tpu.dot_dimension_numbers<[1], [0], [0], [1], [0, 0, 1, 1], [], []>} : vector<8x16xbf16>, vector<16x32xbf16>, vector<8x32xf32> -> vector<8x32xf32>
    %c16 = arith.constant 16 : index
    %c0_6 = arith.constant 0 : index
    %10 = vector.load %arg1[%c16, %c0_6] : memref<120x32xf32, #tpu.memory_space<vmem>>, vector<1x32xf32>
    %11 = vector.broadcast %10 : vector<1x32xf32> to vector<8x32xf32>
    %12 = arith.addf %9, %11 : vector<8x32xf32>
    %cst_7 = arith.constant 0.000000e+00 : f32
    %13 = vector.broadcast %cst_7 : f32 to vector<8x32xf32>
    %14 = arith.maximumf %12, %13 : vector<8x32xf32>
    %15 = math.absf %12 : vector<8x32xf32>
    %cst_8 = arith.constant 0.000000e+00 : f32
    %16 = vector.broadcast %cst_8 : f32 to vector<8x32xf32>
    %17 = arith.subf %16, %15 : vector<8x32xf32>
    %18 = math.exp %17 : vector<8x32xf32>
    %19 = math.log1p %18 : vector<8x32xf32>
    %20 = arith.addf %14, %19 : vector<8x32xf32>
    %21 = arith.truncf %3 : vector<16x16xf32> to vector<16x16xbf16>
    %c72 = arith.constant 72 : index
    %c0_9 = arith.constant 0 : index
    %22 = vector.load %arg0[%c72, %c0_9] : memref<840x32xbf16, #tpu.memory_space<vmem>>, vector<16x32xbf16>
    %cst_10 = arith.constant dense<0.000000e+00> : vector<16x32xf32>
    %23 = tpu.matmul %21, %22, %cst_10 {dimension_numbers = #tpu.dot_dimension_numbers<[1], [0], [0], [1], [0, 0, 1, 1], [], []>} : vector<16x16xbf16>, vector<16x32xbf16>, vector<16x32xf32> -> vector<16x32xf32>
    %c24_11 = arith.constant 24 : index
    %c0_12 = arith.constant 0 : index
    %24 = vector.load %arg1[%c24_11, %c0_12] : memref<120x32xf32, #tpu.memory_space<vmem>>, vector<1x32xf32>
    %25 = vector.broadcast %24 : vector<1x32xf32> to vector<16x32xf32>
    %26 = arith.addf %23, %25 : vector<16x32xf32>
    %cst_13 = arith.constant 0.000000e+00 : f32
    %27 = vector.broadcast %cst_13 : f32 to vector<16x32xf32>
    %28 = arith.maximumf %26, %27 : vector<16x32xf32>
    %29 = math.absf %26 : vector<16x32xf32>
    %cst_14 = arith.constant 0.000000e+00 : f32
    %30 = vector.broadcast %cst_14 : f32 to vector<16x32xf32>
    %31 = arith.subf %30, %29 : vector<16x32xf32>
    %32 = math.exp %31 : vector<16x32xf32>
    %33 = math.log1p %32 : vector<16x32xf32>
    %34 = arith.addf %28, %33 : vector<16x32xf32>
    %35 = arith.truncf %6 : vector<1x4xf32> to vector<1x4xbf16>
    %c88 = arith.constant 88 : index
    %c0_15 = arith.constant 0 : index
    %36 = vector.load %arg0[%c88, %c0_15] : memref<840x32xbf16, #tpu.memory_space<vmem>>, vector<4x32xbf16>
    %cst_16 = arith.constant dense<0.000000e+00> : vector<1x32xf32>
    %37 = tpu.matmul %35, %36, %cst_16 {dimension_numbers = #tpu.dot_dimension_numbers<[1], [0], [0], [1], [0, 0, 1, 1], [], []>} : vector<1x4xbf16>, vector<4x32xbf16>, vector<1x32xf32> -> vector<1x32xf32>
    %c32 = arith.constant 32 : index
    %c0_17 = arith.constant 0 : index
    %38 = vector.load %arg1[%c32, %c0_17] : memref<120x32xf32, #tpu.memory_space<vmem>>, vector<1x32xf32>
    %39 = arith.addf %37, %38 : vector<1x32xf32>
    %cst_18 = arith.constant 0.000000e+00 : f32
    %40 = vector.broadcast %cst_18 : f32 to vector<1x32xf32>
    %41 = arith.maximumf %39, %40 : vector<1x32xf32>
    %42 = math.absf %39 : vector<1x32xf32>
    %cst_19 = arith.constant 0.000000e+00 : f32
    %43 = vector.broadcast %cst_19 : f32 to vector<1x32xf32>
    %44 = arith.subf %43, %42 : vector<1x32xf32>
    %45 = math.exp %44 : vector<1x32xf32>
    %46 = math.log1p %45 : vector<1x32xf32>
    %47 = arith.addf %41, %46 : vector<1x32xf32>
    %48 = arith.truncf %20 : vector<8x32xf32> to vector<8x32xbf16>
    %49 = arith.truncf %34 : vector<16x32xf32> to vector<16x32xbf16>
    %50 = arith.truncf %47 : vector<1x32xf32> to vector<1x32xbf16>
    %cst_20 = arith.constant dense<0.000000e+00> : vector<16x32xf32>
    %51 = tpu.matmul %4, %48, %cst_20 {dimension_numbers = #tpu.dot_dimension_numbers<[1], [0], [0], [1], [0, 0, 1, 1], [], []>} : vector<16x8xbf16>, vector<8x32xbf16>, vector<16x32xf32> -> vector<16x32xf32>
    %52 = arith.truncf %51 : vector<16x32xf32> to vector<16x32xbf16>
    %c96 = arith.constant 96 : index
    %c0_21 = arith.constant 0 : index
    %53 = vector.load %arg0[%c96, %c0_21] : memref<840x32xbf16, #tpu.memory_space<vmem>>, vector<32x32xbf16>
    %cst_22 = arith.constant dense<0.000000e+00> : vector<16x32xf32>
    %54 = tpu.matmul %52, %53, %cst_22 {dimension_numbers = #tpu.dot_dimension_numbers<[1], [0], [0], [1], [0, 0, 1, 1], [], []>} : vector<16x32xbf16>, vector<32x32xbf16>, vector<16x32xf32> -> vector<16x32xf32>
    %c128 = arith.constant 128 : index
    %c0_23 = arith.constant 0 : index
    %55 = vector.load %arg0[%c128, %c0_23] : memref<840x32xbf16, #tpu.memory_space<vmem>>, vector<32x32xbf16>
    %cst_24 = arith.constant dense<0.000000e+00> : vector<16x32xf32>
    %56 = tpu.matmul %49, %55, %cst_24 {dimension_numbers = #tpu.dot_dimension_numbers<[1], [0], [0], [1], [0, 0, 1, 1], [], []>} : vector<16x32xbf16>, vector<32x32xbf16>, vector<16x32xf32> -> vector<16x32xf32>
    %57 = arith.addf %54, %56 : vector<16x32xf32>
    %c160 = arith.constant 160 : index
    %c0_25 = arith.constant 0 : index
    %58 = vector.load %arg0[%c160, %c0_25] : memref<840x32xbf16, #tpu.memory_space<vmem>>, vector<32x32xbf16>
    %cst_26 = arith.constant dense<0.000000e+00> : vector<1x32xf32>
    %59 = tpu.matmul %50, %58, %cst_26 {dimension_numbers = #tpu.dot_dimension_numbers<[1], [0], [0], [1], [0, 0, 1, 1], [], []>} : vector<1x32xbf16>, vector<32x32xbf16>, vector<1x32xf32> -> vector<1x32xf32>
    %60 = vector.broadcast %59 : vector<1x32xf32> to vector<16x32xf32>
    %61 = arith.addf %57, %60 : vector<16x32xf32>
    %c40_27 = arith.constant 40 : index
    %c0_28 = arith.constant 0 : index
    %62 = vector.load %arg1[%c40_27, %c0_28] : memref<120x32xf32, #tpu.memory_space<vmem>>, vector<1x32xf32>
    %63 = vector.broadcast %62 : vector<1x32xf32> to vector<16x32xf32>
    %64 = arith.addf %61, %63 : vector<16x32xf32>
    %cst_29 = arith.constant 0.000000e+00 : f32
    %65 = vector.broadcast %cst_29 : f32 to vector<16x32xf32>
    %66 = arith.maximumf %64, %65 : vector<16x32xf32>
    %67 = math.absf %64 : vector<16x32xf32>
    %cst_30 = arith.constant 0.000000e+00 : f32
    %68 = vector.broadcast %cst_30 : f32 to vector<16x32xf32>
    %69 = arith.subf %68, %67 : vector<16x32xf32>
    %70 = math.exp %69 : vector<16x32xf32>
    %71 = math.log1p %70 : vector<16x32xf32>
    %72 = arith.addf %66, %71 : vector<16x32xf32>
    %73 = arith.truncf %72 : vector<16x32xf32> to vector<16x32xbf16>
    %cst_31 = arith.constant dense<0.000000e+00> : vector<8x32xf32>
    %74 = tpu.matmul %5, %73, %cst_31 {dimension_numbers = #tpu.dot_dimension_numbers<[1], [0], [0], [1], [0, 0, 1, 1], [], []>} : vector<8x16xbf16>, vector<16x32xbf16>, vector<8x32xf32> -> vector<8x32xf32>
    %75 = arith.truncf %74 : vector<8x32xf32> to vector<8x32xbf16>
    %c192 = arith.constant 192 : index
    %c0_32 = arith.constant 0 : index
    %76 = vector.load %arg0[%c192, %c0_32] : memref<840x32xbf16, #tpu.memory_space<vmem>>, vector<32x32xbf16>
    %cst_33 = arith.constant dense<0.000000e+00> : vector<8x32xf32>
    %77 = tpu.matmul %75, %76, %cst_33 {dimension_numbers = #tpu.dot_dimension_numbers<[1], [0], [0], [1], [0, 0, 1, 1], [], []>} : vector<8x32xbf16>, vector<32x32xbf16>, vector<8x32xf32> -> vector<8x32xf32>
    %c224 = arith.constant 224 : index
    %c0_34 = arith.constant 0 : index
    %78 = vector.load %arg0[%c224, %c0_34] : memref<840x32xbf16, #tpu.memory_space<vmem>>, vector<32x32xbf16>
    %cst_35 = arith.constant dense<0.000000e+00> : vector<8x32xf32>
    %79 = tpu.matmul %48, %78, %cst_35 {dimension_numbers = #tpu.dot_dimension_numbers<[1], [0], [0], [1], [0, 0, 1, 1], [], []>} : vector<8x32xbf16>, vector<32x32xbf16>, vector<8x32xf32> -> vector<8x32xf32>
    %80 = arith.addf %77, %79 : vector<8x32xf32>
    %c256 = arith.constant 256 : index
    %c0_36 = arith.constant 0 : index
    %81 = vector.load %arg0[%c256, %c0_36] : memref<840x32xbf16, #tpu.memory_space<vmem>>, vector<32x32xbf16>
    %cst_37 = arith.constant dense<0.000000e+00> : vector<1x32xf32>
    %82 = tpu.matmul %50, %81, %cst_37 {dimension_numbers = #tpu.dot_dimension_numbers<[1], [0], [0], [1], [0, 0, 1, 1], [], []>} : vector<1x32xbf16>, vector<32x32xbf16>, vector<1x32xf32> -> vector<1x32xf32>
    %83 = vector.broadcast %82 : vector<1x32xf32> to vector<8x32xf32>
    %84 = arith.addf %80, %83 : vector<8x32xf32>
    %c48 = arith.constant 48 : index
    %c0_38 = arith.constant 0 : index
    %85 = vector.load %arg1[%c48, %c0_38] : memref<120x32xf32, #tpu.memory_space<vmem>>, vector<1x32xf32>
    %86 = vector.broadcast %85 : vector<1x32xf32> to vector<8x32xf32>
    %87 = arith.addf %84, %86 : vector<8x32xf32>
    %cst_39 = arith.constant 0.000000e+00 : f32
    %88 = vector.broadcast %cst_39 : f32 to vector<8x32xf32>
    %89 = arith.maximumf %87, %88 : vector<8x32xf32>
    %90 = math.absf %87 : vector<8x32xf32>
    %cst_40 = arith.constant 0.000000e+00 : f32
    %91 = vector.broadcast %cst_40 : f32 to vector<8x32xf32>
    %92 = arith.subf %91, %90 : vector<8x32xf32>
    %93 = math.exp %92 : vector<8x32xf32>
    %94 = math.log1p %93 : vector<8x32xf32>
    %95 = arith.addf %89, %94 : vector<8x32xf32>
    %cst_41 = arith.constant dense<0.000000e+00> : vector<32xf32>
    %96 = vector.multi_reduction <add>, %72, %cst_41 [0] : vector<16x32xf32> to vector<32xf32>
    %97 = vector.shape_cast %96 : vector<32xf32> to vector<1x32xf32>
    %cst_42 = arith.constant 6.250000e-02 : f32
    %98 = vector.broadcast %cst_42 : f32 to vector<1x32xf32>
    %99 = arith.mulf %97, %98 : vector<1x32xf32>
    %cst_43 = arith.constant dense<0.000000e+00> : vector<32xf32>
    %100 = vector.multi_reduction <add>, %95, %cst_43 [0] : vector<8x32xf32> to vector<32xf32>
    %101 = vector.shape_cast %100 : vector<32xf32> to vector<1x32xf32>
    %cst_44 = arith.constant 1.250000e-01 : f32
    %102 = vector.broadcast %cst_44 : f32 to vector<1x32xf32>
    %103 = arith.mulf %101, %102 : vector<1x32xf32>
    %104 = arith.truncf %99 : vector<1x32xf32> to vector<1x32xbf16>
    %c288 = arith.constant 288 : index
    %c0_45 = arith.constant 0 : index
    %105 = vector.load %arg0[%c288, %c0_45] : memref<840x32xbf16, #tpu.memory_space<vmem>>, vector<32x32xbf16>
    %cst_46 = arith.constant dense<0.000000e+00> : vector<1x32xf32>
    %106 = tpu.matmul %104, %105, %cst_46 {dimension_numbers = #tpu.dot_dimension_numbers<[1], [0], [0], [1], [0, 0, 1, 1], [], []>} : vector<1x32xbf16>, vector<32x32xbf16>, vector<1x32xf32> -> vector<1x32xf32>
    %107 = arith.truncf %103 : vector<1x32xf32> to vector<1x32xbf16>
    %c320 = arith.constant 320 : index
    %c0_47 = arith.constant 0 : index
    %108 = vector.load %arg0[%c320, %c0_47] : memref<840x32xbf16, #tpu.memory_space<vmem>>, vector<32x32xbf16>
    %cst_48 = arith.constant dense<0.000000e+00> : vector<1x32xf32>
    %109 = tpu.matmul %107, %108, %cst_48 {dimension_numbers = #tpu.dot_dimension_numbers<[1], [0], [0], [1], [0, 0, 1, 1], [], []>} : vector<1x32xbf16>, vector<32x32xbf16>, vector<1x32xf32> -> vector<1x32xf32>
    %110 = arith.addf %106, %109 : vector<1x32xf32>
    %c352 = arith.constant 352 : index
    %c0_49 = arith.constant 0 : index
    %111 = vector.load %arg0[%c352, %c0_49] : memref<840x32xbf16, #tpu.memory_space<vmem>>, vector<32x32xbf16>
    %cst_50 = arith.constant dense<0.000000e+00> : vector<1x32xf32>
    %112 = tpu.matmul %50, %111, %cst_50 {dimension_numbers = #tpu.dot_dimension_numbers<[1], [0], [0], [1], [0, 0, 1, 1], [], []>} : vector<1x32xbf16>, vector<32x32xbf16>, vector<1x32xf32> -> vector<1x32xf32>
    %113 = arith.addf %110, %112 : vector<1x32xf32>
    %c56_51 = arith.constant 56 : index
    %c0_52 = arith.constant 0 : index
    %114 = vector.load %arg1[%c56_51, %c0_52] : memref<120x32xf32, #tpu.memory_space<vmem>>, vector<1x32xf32>
    %115 = arith.addf %113, %114 : vector<1x32xf32>
    %cst_53 = arith.constant 0.000000e+00 : f32
    %116 = vector.broadcast %cst_53 : f32 to vector<1x32xf32>
    %117 = arith.maximumf %115, %116 : vector<1x32xf32>
    %118 = math.absf %115 : vector<1x32xf32>
    %cst_54 = arith.constant 0.000000e+00 : f32
    %119 = vector.broadcast %cst_54 : f32 to vector<1x32xf32>
    %120 = arith.subf %119, %118 : vector<1x32xf32>
    %121 = math.exp %120 : vector<1x32xf32>
    %122 = math.log1p %121 : vector<1x32xf32>
    %123 = arith.addf %117, %122 : vector<1x32xf32>
    %124 = arith.addf %20, %95 : vector<8x32xf32>
    %125 = arith.addf %34, %72 : vector<16x32xf32>
    %126 = arith.addf %47, %123 : vector<1x32xf32>
    %127 = arith.truncf %124 : vector<8x32xf32> to vector<8x32xbf16>
    %c384 = arith.constant 384 : index
    %c0_55 = arith.constant 0 : index
    %128 = vector.load %arg0[%c384, %c0_55] : memref<840x32xbf16, #tpu.memory_space<vmem>>, vector<32x32xbf16>
    %cst_56 = arith.constant dense<0.000000e+00> : vector<8x32xf32>
    %129 = tpu.matmul %127, %128, %cst_56 {dimension_numbers = #tpu.dot_dimension_numbers<[1], [0], [0], [1], [0, 0, 1, 1], [], []>} : vector<8x32xbf16>, vector<32x32xbf16>, vector<8x32xf32> -> vector<8x32xf32>
    %c64 = arith.constant 64 : index
    %c0_57 = arith.constant 0 : index
    %130 = vector.load %arg1[%c64, %c0_57] : memref<120x32xf32, #tpu.memory_space<vmem>>, vector<1x32xf32>
    %131 = vector.broadcast %130 : vector<1x32xf32> to vector<8x32xf32>
    %132 = arith.addf %129, %131 : vector<8x32xf32>
    %cst_58 = arith.constant 0.000000e+00 : f32
    %133 = vector.broadcast %cst_58 : f32 to vector<8x32xf32>
    %134 = arith.maximumf %132, %133 : vector<8x32xf32>
    %135 = math.absf %132 : vector<8x32xf32>
    %cst_59 = arith.constant 0.000000e+00 : f32
    %136 = vector.broadcast %cst_59 : f32 to vector<8x32xf32>
    %137 = arith.subf %136, %135 : vector<8x32xf32>
    %138 = math.exp %137 : vector<8x32xf32>
    %139 = math.log1p %138 : vector<8x32xf32>
    %140 = arith.addf %134, %139 : vector<8x32xf32>
    %141 = arith.truncf %125 : vector<16x32xf32> to vector<16x32xbf16>
    %c416 = arith.constant 416 : index
    %c0_60 = arith.constant 0 : index
    %142 = vector.load %arg0[%c416, %c0_60] : memref<840x32xbf16, #tpu.memory_space<vmem>>, vector<32x32xbf16>
    %cst_61 = arith.constant dense<0.000000e+00> : vector<16x32xf32>
    %143 = tpu.matmul %141, %142, %cst_61 {dimension_numbers = #tpu.dot_dimension_numbers<[1], [0], [0], [1], [0, 0, 1, 1], [], []>} : vector<16x32xbf16>, vector<32x32xbf16>, vector<16x32xf32> -> vector<16x32xf32>
    %c72_62 = arith.constant 72 : index
    %c0_63 = arith.constant 0 : index
    %144 = vector.load %arg1[%c72_62, %c0_63] : memref<120x32xf32, #tpu.memory_space<vmem>>, vector<1x32xf32>
    %145 = vector.broadcast %144 : vector<1x32xf32> to vector<16x32xf32>
    %146 = arith.addf %143, %145 : vector<16x32xf32>
    %cst_64 = arith.constant 0.000000e+00 : f32
    %147 = vector.broadcast %cst_64 : f32 to vector<16x32xf32>
    %148 = arith.maximumf %146, %147 : vector<16x32xf32>
    %149 = math.absf %146 : vector<16x32xf32>
    %cst_65 = arith.constant 0.000000e+00 : f32
    %150 = vector.broadcast %cst_65 : f32 to vector<16x32xf32>
    %151 = arith.subf %150, %149 : vector<16x32xf32>
    %152 = math.exp %151 : vector<16x32xf32>
    %153 = math.log1p %152 : vector<16x32xf32>
    %154 = arith.addf %148, %153 : vector<16x32xf32>
    %155 = arith.truncf %126 : vector<1x32xf32> to vector<1x32xbf16>
    %c448 = arith.constant 448 : index
    %c0_66 = arith.constant 0 : index
    %156 = vector.load %arg0[%c448, %c0_66] : memref<840x32xbf16, #tpu.memory_space<vmem>>, vector<32x32xbf16>
    %cst_67 = arith.constant dense<0.000000e+00> : vector<1x32xf32>
    %157 = tpu.matmul %155, %156, %cst_67 {dimension_numbers = #tpu.dot_dimension_numbers<[1], [0], [0], [1], [0, 0, 1, 1], [], []>} : vector<1x32xbf16>, vector<32x32xbf16>, vector<1x32xf32> -> vector<1x32xf32>
    %c80 = arith.constant 80 : index
    %c0_68 = arith.constant 0 : index
    %158 = vector.load %arg1[%c80, %c0_68] : memref<120x32xf32, #tpu.memory_space<vmem>>, vector<1x32xf32>
    %159 = arith.addf %157, %158 : vector<1x32xf32>
    %cst_69 = arith.constant 0.000000e+00 : f32
    %160 = vector.broadcast %cst_69 : f32 to vector<1x32xf32>
    %161 = arith.maximumf %159, %160 : vector<1x32xf32>
    %162 = math.absf %159 : vector<1x32xf32>
    %cst_70 = arith.constant 0.000000e+00 : f32
    %163 = vector.broadcast %cst_70 : f32 to vector<1x32xf32>
    %164 = arith.subf %163, %162 : vector<1x32xf32>
    %165 = math.exp %164 : vector<1x32xf32>
    %166 = math.log1p %165 : vector<1x32xf32>
    %167 = arith.addf %161, %166 : vector<1x32xf32>
    %168 = arith.truncf %140 : vector<8x32xf32> to vector<8x32xbf16>
    %169 = arith.truncf %154 : vector<16x32xf32> to vector<16x32xbf16>
    %170 = arith.truncf %167 : vector<1x32xf32> to vector<1x32xbf16>
    %cst_71 = arith.constant dense<0.000000e+00> : vector<16x32xf32>
    %171 = tpu.matmul %4, %168, %cst_71 {dimension_numbers = #tpu.dot_dimension_numbers<[1], [0], [0], [1], [0, 0, 1, 1], [], []>} : vector<16x8xbf16>, vector<8x32xbf16>, vector<16x32xf32> -> vector<16x32xf32>
    %172 = arith.truncf %171 : vector<16x32xf32> to vector<16x32xbf16>
    %c480 = arith.constant 480 : index
    %c0_72 = arith.constant 0 : index
    %173 = vector.load %arg0[%c480, %c0_72] : memref<840x32xbf16, #tpu.memory_space<vmem>>, vector<32x32xbf16>
    %cst_73 = arith.constant dense<0.000000e+00> : vector<16x32xf32>
    %174 = tpu.matmul %172, %173, %cst_73 {dimension_numbers = #tpu.dot_dimension_numbers<[1], [0], [0], [1], [0, 0, 1, 1], [], []>} : vector<16x32xbf16>, vector<32x32xbf16>, vector<16x32xf32> -> vector<16x32xf32>
    %c512 = arith.constant 512 : index
    %c0_74 = arith.constant 0 : index
    %175 = vector.load %arg0[%c512, %c0_74] : memref<840x32xbf16, #tpu.memory_space<vmem>>, vector<32x32xbf16>
    %cst_75 = arith.constant dense<0.000000e+00> : vector<16x32xf32>
    %176 = tpu.matmul %169, %175, %cst_75 {dimension_numbers = #tpu.dot_dimension_numbers<[1], [0], [0], [1], [0, 0, 1, 1], [], []>} : vector<16x32xbf16>, vector<32x32xbf16>, vector<16x32xf32> -> vector<16x32xf32>
    %177 = arith.addf %174, %176 : vector<16x32xf32>
    %c544 = arith.constant 544 : index
    %c0_76 = arith.constant 0 : index
    %178 = vector.load %arg0[%c544, %c0_76] : memref<840x32xbf16, #tpu.memory_space<vmem>>, vector<32x32xbf16>
    %cst_77 = arith.constant dense<0.000000e+00> : vector<1x32xf32>
    %179 = tpu.matmul %170, %178, %cst_77 {dimension_numbers = #tpu.dot_dimension_numbers<[1], [0], [0], [1], [0, 0, 1, 1], [], []>} : vector<1x32xbf16>, vector<32x32xbf16>, vector<1x32xf32> -> vector<1x32xf32>
    %180 = vector.broadcast %179 : vector<1x32xf32> to vector<16x32xf32>
    %181 = arith.addf %177, %180 : vector<16x32xf32>
    %c88_78 = arith.constant 88 : index
    %c0_79 = arith.constant 0 : index
    %182 = vector.load %arg1[%c88_78, %c0_79] : memref<120x32xf32, #tpu.memory_space<vmem>>, vector<1x32xf32>
    %183 = vector.broadcast %182 : vector<1x32xf32> to vector<16x32xf32>
    %184 = arith.addf %181, %183 : vector<16x32xf32>
    %cst_80 = arith.constant 0.000000e+00 : f32
    %185 = vector.broadcast %cst_80 : f32 to vector<16x32xf32>
    %186 = arith.maximumf %184, %185 : vector<16x32xf32>
    %187 = math.absf %184 : vector<16x32xf32>
    %cst_81 = arith.constant 0.000000e+00 : f32
    %188 = vector.broadcast %cst_81 : f32 to vector<16x32xf32>
    %189 = arith.subf %188, %187 : vector<16x32xf32>
    %190 = math.exp %189 : vector<16x32xf32>
    %191 = math.log1p %190 : vector<16x32xf32>
    %192 = arith.addf %186, %191 : vector<16x32xf32>
    %193 = arith.truncf %192 : vector<16x32xf32> to vector<16x32xbf16>
    %cst_82 = arith.constant dense<0.000000e+00> : vector<8x32xf32>
    %194 = tpu.matmul %5, %193, %cst_82 {dimension_numbers = #tpu.dot_dimension_numbers<[1], [0], [0], [1], [0, 0, 1, 1], [], []>} : vector<8x16xbf16>, vector<16x32xbf16>, vector<8x32xf32> -> vector<8x32xf32>
    %195 = arith.truncf %194 : vector<8x32xf32> to vector<8x32xbf16>
    %c576 = arith.constant 576 : index
    %c0_83 = arith.constant 0 : index
    %196 = vector.load %arg0[%c576, %c0_83] : memref<840x32xbf16, #tpu.memory_space<vmem>>, vector<32x32xbf16>
    %cst_84 = arith.constant dense<0.000000e+00> : vector<8x32xf32>
    %197 = tpu.matmul %195, %196, %cst_84 {dimension_numbers = #tpu.dot_dimension_numbers<[1], [0], [0], [1], [0, 0, 1, 1], [], []>} : vector<8x32xbf16>, vector<32x32xbf16>, vector<8x32xf32> -> vector<8x32xf32>
    %c608 = arith.constant 608 : index
    %c0_85 = arith.constant 0 : index
    %198 = vector.load %arg0[%c608, %c0_85] : memref<840x32xbf16, #tpu.memory_space<vmem>>, vector<32x32xbf16>
    %cst_86 = arith.constant dense<0.000000e+00> : vector<8x32xf32>
    %199 = tpu.matmul %168, %198, %cst_86 {dimension_numbers = #tpu.dot_dimension_numbers<[1], [0], [0], [1], [0, 0, 1, 1], [], []>} : vector<8x32xbf16>, vector<32x32xbf16>, vector<8x32xf32> -> vector<8x32xf32>
    %200 = arith.addf %197, %199 : vector<8x32xf32>
    %c640 = arith.constant 640 : index
    %c0_87 = arith.constant 0 : index
    %201 = vector.load %arg0[%c640, %c0_87] : memref<840x32xbf16, #tpu.memory_space<vmem>>, vector<32x32xbf16>
    %cst_88 = arith.constant dense<0.000000e+00> : vector<1x32xf32>
    %202 = tpu.matmul %170, %201, %cst_88 {dimension_numbers = #tpu.dot_dimension_numbers<[1], [0], [0], [1], [0, 0, 1, 1], [], []>} : vector<1x32xbf16>, vector<32x32xbf16>, vector<1x32xf32> -> vector<1x32xf32>
    %203 = vector.broadcast %202 : vector<1x32xf32> to vector<8x32xf32>
    %204 = arith.addf %200, %203 : vector<8x32xf32>
    %c96_89 = arith.constant 96 : index
    %c0_90 = arith.constant 0 : index
    %205 = vector.load %arg1[%c96_89, %c0_90] : memref<120x32xf32, #tpu.memory_space<vmem>>, vector<1x32xf32>
    %206 = vector.broadcast %205 : vector<1x32xf32> to vector<8x32xf32>
    %207 = arith.addf %204, %206 : vector<8x32xf32>
    %cst_91 = arith.constant 0.000000e+00 : f32
    %208 = vector.broadcast %cst_91 : f32 to vector<8x32xf32>
    %209 = arith.maximumf %207, %208 : vector<8x32xf32>
    %210 = math.absf %207 : vector<8x32xf32>
    %cst_92 = arith.constant 0.000000e+00 : f32
    %211 = vector.broadcast %cst_92 : f32 to vector<8x32xf32>
    %212 = arith.subf %211, %210 : vector<8x32xf32>
    %213 = math.exp %212 : vector<8x32xf32>
    %214 = math.log1p %213 : vector<8x32xf32>
    %215 = arith.addf %209, %214 : vector<8x32xf32>
    %216 = arith.addf %140, %215 : vector<8x32xf32>
    %217 = arith.truncf %216 : vector<8x32xf32> to vector<8x32xbf16>
    %c768 = arith.constant 768 : index
    %c0_93 = arith.constant 0 : index
    %218 = vector.load %arg0[%c768, %c0_93] : memref<840x32xbf16, #tpu.memory_space<vmem>>, vector<32x1xbf16>
    %cst_94 = arith.constant dense<0.000000e+00> : vector<8x1xf32>
    %219 = tpu.matmul %217, %218, %cst_94 {dimension_numbers = #tpu.dot_dimension_numbers<[1], [0], [0], [1], [0, 0, 1, 1], [], []>} : vector<8x32xbf16>, vector<32x1xbf16>, vector<8x1xf32> -> vector<8x1xf32>
    %c800 = arith.constant 800 : index
    %c0_95 = arith.constant 0 : index
    %220 = vector.load %arg0[%c800, %c0_95] : memref<840x32xbf16, #tpu.memory_space<vmem>>, vector<32x1xbf16>
    %cst_96 = arith.constant dense<0.000000e+00> : vector<8x1xf32>
    %221 = tpu.matmul %217, %220, %cst_96 {dimension_numbers = #tpu.dot_dimension_numbers<[1], [0], [0], [1], [0, 0, 1, 1], [], []>} : vector<8x32xbf16>, vector<32x1xbf16>, vector<8x1xf32> -> vector<8x1xf32>
    %c0_97 = arith.constant 0 : index
    %c0_98 = arith.constant 0 : index
    %222 = vector.load %arg1[%c0_97, %c0_98] : memref<120x32xf32, #tpu.memory_space<vmem>>, vector<8x8xf32>
    %c8_99 = arith.constant 8 : index
    %c0_100 = arith.constant 0 : index
    %223 = vector.load %arg1[%c8_99, %c0_100] : memref<120x32xf32, #tpu.memory_space<vmem>>, vector<8x8xf32>
    %224 = vector.broadcast %219 : vector<8x1xf32> to vector<8x8xf32>
    %225 = arith.mulf %224, %222 : vector<8x8xf32>
    %cst_101 = arith.constant dense<0.000000e+00> : vector<8xf32>
    %226 = vector.multi_reduction <add>, %225, %cst_101 [0] : vector<8x8xf32> to vector<8xf32>
    %227 = vector.shape_cast %226 : vector<8xf32> to vector<1x8xf32>
    %228 = vector.broadcast %221 : vector<8x1xf32> to vector<8x8xf32>
    %229 = arith.mulf %228, %223 : vector<8x8xf32>
    %cst_102 = arith.constant dense<0.000000e+00> : vector<8xf32>
    %230 = vector.multi_reduction <add>, %229, %cst_102 [0] : vector<8x8xf32> to vector<8xf32>
    %231 = vector.shape_cast %230 : vector<8xf32> to vector<1x8xf32>
    %c832 = arith.constant 832 : index
    %c0_103 = arith.constant 0 : index
    %232 = vector.load %arg0[%c832, %c0_103] : memref<840x32xbf16, #tpu.memory_space<vmem>>, vector<1x4xbf16>
    %c48_104 = arith.constant 48 : index
    %c0_105 = arith.constant 0 : index
    %233 = vector.load %arg0[%c48_104, %c0_105] : memref<840x32xbf16, #tpu.memory_space<vmem>>, vector<4x8xbf16>
    %cst_106 = arith.constant dense<0.000000e+00> : vector<1x8xf32>
    %234 = tpu.matmul %232, %233, %cst_106 {dimension_numbers = #tpu.dot_dimension_numbers<[1], [0], [0], [1], [0, 0, 1, 1], [], []>} : vector<1x4xbf16>, vector<4x8xbf16>, vector<1x8xf32> -> vector<1x8xf32>
    %235 = arith.addf %227, %231 : vector<1x8xf32>
    %236 = arith.addf %235, %234 : vector<1x8xf32>
    %c112 = arith.constant 112 : index
    %c0_107 = arith.constant 0 : index
    %237 = vector.load %arg1[%c112, %c0_107] : memref<120x32xf32, #tpu.memory_space<vmem>>, vector<1x1xf32>
    %238 = vector.broadcast %237 : vector<1x1xf32> to vector<1x8xf32>
    %239 = arith.addf %236, %238 : vector<1x8xf32>
    %c0_108 = arith.constant 0 : index
    %c0_109 = arith.constant 0 : index
    %240 = vector.load %arg2[%c0_108, %c0_109] : memref<1x8xf32, #tpu.memory_space<vmem>>, vector<1x8xf32>
    tpu.vector_store %arg2[%c0_108, %c0_109], %239 {strides = array<i32>} : memref<1x8xf32, #tpu.memory_space<vmem>>, vector<1x8xf32>,
    return
  }
}

</mosaic_0001>

<bundles_post_ra>
// kernel: megnet_forward.1
= control target key start
LH: loop header
LB: loop body
LE: loop exit
PB: predicated region body
PF: predicated region fallthrough
CT: control target
= control target key end

     0   :  { %v2467_v1 = vmov 0.0   ;;  %vm2468_vm0 = vmmov 0   ;;  %vm32_vm1 = vcmask 130048   ;;  %vm189_vm2 = vcmask 1041408   ;;  %s2920_s0 = inlined_call_operand.vmem [shape: bf16[840,32], index: 0, kind: input, shape index: {}]   ;;  %s2921_s1 = inlined_call_operand.vmem [shape: f32[120,32], index: 1, kind: input, shape index: {}]   ;;  %s2922_s2 = inlined_call_operand.hbm [shape: f32[1,8], index: 2, kind: output, shape index: {}]  }
   0x1   :  { %v2339_v0 = vld [vmem:[%s2920_s0 + $0x1c] sm:$0xff]   ;;  %2125 = vmatprep.subr.bf16.mxu0 %v2467_v1  ;;  %2131 = vmatprep.subr.bf16.mxu1 %v2467_v1  ;;  %v2340_v2 = vld [vmem:[%s2920_s0 + $0x24] sm:$0xff]   ;;  %v183_v5 = vld [vmem:[%s2920_s0 + $0x2c] sm:$0x3]  ;;  %v2469_v7 = vmov 0  }
   0x2   :  { %2126 = vmatpush3.bf16.msra.mxu0 %v2339_v0  ;;  %2127 = vmatprep.mubr.msk.bf16.mxu0 %vm2468_vm0, %v2467_v1  ;;  %v13_v3 = vld [vmem:[%s2920_s0] sm:$0xf]  ;;  %v2341_v4 = vld [vmem:[%s2920_s0 + $0x4] sm:$0xff]   ;;  %v191_v6 = vsel %vm189_vm2, %v183_v5, 0 }
   0x3   :  { %2132 = vmatpush3.bf16.msra.mxu1 %v2340_v2  ;;  %2133 = vmatprep.mubr.msk.bf16.mxu1 %vm2468_vm0, %v2467_v1 }
   0x4   :  { %2137 = vmatprep.subr.bf16.mxu0 %v2467_v1  ;;  %2143 = vmatprep.subr.bf16.mxu1 %v2467_v1 }
   0x5   :  { %2128 = vmatmul.mubr.msk.bf16.vlgmr.msra.gmra.mrb[0].mxu0 %vm32_vm1, %v13_v3  ;;  %2337 = vset.pattern.permute.xlu0 %v2469_v7 }
   0x6   :  { %2134 = vmatmul.mubr.msk.bf16.vlgmr.msra.gmra.mrb[0].mxu1 %vm32_vm1, %v2341_v4  ;;  %2138 = vmatpush3.bf16.msra.mxu0 %v191_v6 }
   0x7   :  { %2139 = vmatprep.mubr.msk.bf16.mxu0 %vm2468_vm0, %v2467_v1  ;;  %2149 = vmatprep.subr.bf16.mxu0 %v2467_v1 }
   0x8   :  { %2145 = vmatprep.mubr.msk.bf16.mxu1 %vm2468_vm0, %v2467_v1  ;;  %2338 = vset.pattern.permute.xlu1 %v2469_v7 }
   0xd   :  { %2140 = vmatmul.mubr.bf16.vlgmr.msra.gmra.mrb[4].mxu0 %v2469_v7 }
   0xe   :  { %2153 = vmatprep.mubr.msk.bf16.mxu0 %vm2468_vm0, %v2467_v1 }
   0xf   :  { %7 = vsyncpa [#allocation3], 0  ;;  %v2342_v8 = vld [vmem:[%s2920_s0 + $0x40] sm:$0xff]   ;;  %v2343_v9 = vld [vmem:[%s2920_s0 + $0x48] sm:$0xff]   ;;  %vm260_vm6 = vcmask 1043456   ;;  %vm326_vm7 = vcmask 261120  }
  0x10   :  { %2150 = vmatpush3.bf16.msra.mxu0 %v2342_v8  ;;  %v1970_v10 = vld [vmem:[%s2921_s1 + $0x10] ss:$0 sm:$0xff]  ;;  %v1973_v11 = vld [vmem:[%s2921_s1 + $0x18] ss:$0 sm:$0xff]  ;;  %v184_v28 = vld [vmem:[%s2921_s1 + $0x20] sm:$0x1] }
  0x11   :  { %2151 = vmatprep.subr.bf16.mxu0 %v2467_v1  ;;  %vm256_vm9 = vcmask 64512  }
  0x14   :  { %2152 = vmatpush3.bf16.msra.mxu0 %v2343_v9 }
  0x15   :  { %2165 = vmatprep.subr.bf16.mxu0 %v2467_v1 }
  0xd8   :  { %v70_v12 = vpop.f32.mrb[0].mxu0 }
  0xd9   :  { %v2533_v13 = vadd.f32 %v1970_v10, %v70_v12  ;;  %v146_v14 = vpop.f32.mrb[0].mxu1  ;;  %v2129_v15 = vpop.f32.mrb[1].mxu0 }
  0xda   :  { %v2535_v16 = vadd.f32 %v1973_v11, %v146_v14  ;;  %v2135_v17 = vpop.f32.mrb[1].mxu1  ;;  %v73_v18 = vpop.f32.mrb[2].mxu0 }
  0xdb   :  { %v77_v19 = vand.u32 2147483647, %v2533_v13  ;;  %v149_v20 = vpop.f32.mrb[2].mxu1  ;;  %v2130_v21 = vpop.f32.mrb[3].mxu0  ;;  %v76_v2 = vmax.f32 %v2533_v13, 0.0 }
  0xdc   :  { %v155_v22 = vand.u32 2147483647, %v2535_v16  ;;  %v2539_v23 = vadd.f32 %v1973_v11, %v149_v20  ;;  %v2136_v24 = vpop.f32.mrb[3].mxu1  ;;  %v153_v0 = vmax.f32 %v2535_v16, 0.0  ;;  %v2344_v21 = vld [vmem:[%s2920_s0 + $0x50] sm:$0xff]  }
  0xdd   :  { %v78_v25 = vsub.f32 0.0, %v77_v19 }
  0xde   :  { %v157_v26 = vsub.f32 0.0, %v155_v22  ;;  %v156_v27 = vand.u32 2147483647, %v2539_v23  ;;  %v154_v7 = vmax.f32 %v2539_v23, 0.0  ;;  %v2567_v22 = vld [vmem:[%s2920_s0 + $0xc] sm:$0xff]  }
  0xdf   :  { %v79_v29 = vmul.f32 1.442695, %v78_v25  ;;  %v2351_v25 = vld [vmem:[%s2920_s0 + $0x30] sm:$0xff]  }
  0xe0   :  { %v159_v30 = vmul.f32 1.442695, %v157_v26  ;;  %v158_v31 = vsub.f32 0.0, %v156_v27  ;;  %v227_v32 = vpop.f32.mrb[4].mxu0 }
  0xe1   :  { %2383 = vpow2.f32 %v79_v29  ;;  %v2545_v33 = vadd.f32 %v227_v32, %v184_v28  ;;  %v2141_v34 = vpop.f32.mrb[5].mxu0  ;;  %v2346_v28 = vld [vmem:[%s2920_s0 + $0x58] sm:$0xff]   ;;  %v2349_v32 = vld [vmem:[%s2920_s0 + $0x80] sm:$0xff]  }
  0xe2   :  { %2385 = vpow2.f32 %v159_v30  ;;  %v161_v35 = vmul.f32 1.442695, %v158_v31  ;;  %v230_v36 = vpop.f32.mrb[6].mxu0  ;;  %v2347_v30 = vld [vmem:[%s2920_s0 + $0x70] sm:$0xff]   ;;  %v2348_v31 = vld [vmem:[%s2920_s0 + $0x78] sm:$0xff]  }
  0xe3   :  { %v234_v37 = vand.u32 2147483647, %v2545_v33  ;;  %v2142_v38 = vpop.f32.mrb[7].mxu0  ;;  %v233_v19 = vmax.f32 %v2545_v33, 0.0  ;;  %v2350_v33 = vld [vmem:[%s2920_s0 + $0x88] sm:$0xff]   ;;  %v2352_v34 = vld [vmem:[%s2920_s0 + $0x38] sm:$0xff]  }
  0xe4   :  { %2387 = vpow2.f32 %v161_v35 }
  0xe5   :  { %v235_v39 = vsub.f32 0.0, %v234_v37 }
  0xe7   :  { %v236_v40 = vmul.f32 1.442695, %v235_v39 }
  0xe9   :  { %2389 = vpow2.f32 %v236_v40 }
  0xeb   :  { %v2384_v41 = vpop.eup %2383 }
  0xec   :  { %v2386_v42 = vpop.eup %2385  ;;  %v81_v43 = vadd.f32 1.0, %v2384_v41  ;;  %v84_v48 = vmul.f32 -0.5, %v2384_v41  ;;  %v87_v55 = vand.u32 2147483647, %v2384_v41 }
  0xed   :  { %v163_v44 = vadd.f32 1.0, %v2386_v42  ;;  %v166_v47 = vmul.f32 -0.5, %v2386_v42  ;;  %v169_v54 = vand.u32 2147483647, %v2386_v42 }
  0xee   :  { %v2388_v45 = vpop.eup %2387  ;;  %2391 = vlog2.f32 %v81_v43  ;;  %v85_v53 = vadd.f32 1.0, %v84_v48  ;;  %vm88_vm4 = vcmp.lt.f32.partialorder %v87_v55, 0.0004427343 }
  0xef   :  { %2393 = vlog2.f32 %v163_v44  ;;  %v172_v46 = vadd.f32 1.0, %v2388_v45  ;;  %v175_v49 = vmul.f32 -0.5, %v2388_v45  ;;  %v167_v51 = vadd.f32 1.0, %v166_v47 }
  0xf0   :  { %v178_v57 = vand.u32 2147483647, %v2388_v45  ;;  %v86_v63 = vmul.f32 %v2384_v41, %v85_v53  ;;  %vm170_vm3 = vcmp.lt.f32.partialorder %v169_v54, 0.0004427343 }
  0xf1   :  { %2395 = vlog2.f32 %v172_v46  ;;  %v176_v56 = vadd.f32 1.0, %v175_v49  ;;  %v168_v60 = vmul.f32 %v2386_v42, %v167_v51 }
  0xf2   :  { %vm179_vm5 = vcmp.lt.f32.partialorder %v178_v57, 0.0004427343  ;;  %v2354_v57 = vld [vmem:[%s2920_s0 + $0x98] sm:$0xff]  }
  0xf3   :  { %v2390_v50 = vpop.eup %2389  ;;  %v177_v4 = vmul.f32 %v2388_v45, %v176_v56  ;;  %v2353_v56 = vld [vmem:[%s2920_s0 + $0x90] sm:$0xff]  }
  0xf4   :  { %v238_v52 = vadd.f32 1.0, %v2390_v50  ;;  %v241_v58 = vmul.f32 -0.5, %v2390_v50  ;;  %v244_v12 = vand.u32 2147483647, %v2390_v50 }
  0xf6   :  { %2397 = vlog2.f32 %v238_v52  ;;  %v242_v8 = vadd.f32 1.0, %v241_v58  ;;  %vm245_vm8 = vcmp.lt.f32.partialorder %v244_v12, 0.0004427343  ;;  %v486_v58 = vlaneseq }
  0xf8   :  { %v2392_v59 = vpop.eup %2391  ;;  %v243_v17 = vmul.f32 %v2390_v50, %v242_v8 }
  0xf9   :  { %v2394_v61 = vpop.eup %2393  ;;  %v83_v62 = vmul.f32 0.6931472, %v2392_v59  ;;  %v487_v59 = vshrl.u32 %v486_v58, 7 }
  0xfa   :  { %v165_v3 = vmul.f32 0.6931472, %v2394_v61 }
  0xfb   :  { %v2396_v5 = vpop.eup %2395  ;;  %v89_v6 = vsel %vm88_vm4, %v86_v63, %v83_v62 }
  0xfc   :  { %v2551_v9 = vadd.f32 %v89_v6, %v76_v2  ;;  %v171_v10 = vsel %vm170_vm3, %v168_v60, %v165_v3  ;;  %v174_v11 = vmul.f32 0.6931472, %v2396_v5  ;;  %v2640_v60 = vsub.s32 0, %v487_v59  ;;  %v1988_v2 = vld [vmem:[%s2921_s1 + $0x28] ss:$0 sm:$0xff] }
  0xfd   :  { %v2553_v14 = vadd.f32 %v171_v10, %v153_v0 }
  0xfe   :  { %v180_v15 = vsel %vm179_vm5, %v177_v4, %v174_v11  ;;  %v248_v13 = vpack.c.bf16 %v2551_v9, %v2551_v9 }
  0xff   :  { %v2557_v16 = vadd.f32 %v180_v15, %v154_v7 }
 0x100   :  { %v2398_v18 = vpop.eup %2397  ;;  %v262_v20 = vsel %vm260_vm6, %v248_v13, 0 }
 0x101   :  { %v249_v23 = vpack.c.bf16 %v2557_v16, %v2553_v14  ;;  %v240_v24 = vmul.f32 0.6931472, %v2398_v18  ;;  %2144 = vmatpush3.bf16.msra.mxu1 %v262_v20 }
 0x102   :  { %2157 = vmatprep.subr.bf16.mxu1 %v2467_v1 }
 0x103   :  { %v246_v26 = vsel %vm245_vm8, %v243_v17, %v240_v24  ;;  %2154 = vmatmul.mubr.msk.bf16.vlgmr.msra.gmra.mrb[8].mxu0 %vm326_vm7, %v249_v23  ;;  %vm185_vm8 = vcmask 31744  }
 0x104   :  { %v2576_v27 = vadd.f32 %v246_v26, %v233_v19  ;;  %2166 = vmatpush3.bf16.msra.mxu0 %v2344_v21  ;;  %2146 = vmatmul.mubr.msk.bf16.vlgmr.msra.gmra.mrb[4].mxu1 %vm256_vm9, %v2567_v22 }
 0x105   :  { %2167 = vmatprep.subr.bf16.mxu0 %v2467_v1  ;;  %2169 = vmatprep.mubr.msk.bf16.mxu0 %vm2468_vm0, %v2467_v1 }
 0x106   :  { %2158 = vmatpush3.bf16.msra.mxu1 %v2351_v25  ;;  %2161 = vmatprep.mubr.msk.bf16.mxu1 %vm2468_vm0, %v2467_v1  ;;  %v2590_v29 = vpack.c.bf16 %v2576_v27, %v2576_v27 }
 0x107   :  { %2159 = vmatprep.subr.bf16.mxu1 %v2467_v1 }
 0x108   :  { %2168 = vmatpush3.bf16.msra.mxu0 %v2346_v28 }
 0x109   :  { %2179 = vmatprep.subr.bf16.mxu0 %v2467_v1 }
 0x10a   :  { %2160 = vmatpush3.bf16.msra.mxu1 %v2352_v34 }
 0x10b   :  { %2170 = vmatmul.mubr.msk.bf16.vlgmr.msra.gmra.mrb[12].mxu0 %vm326_vm7, %v2590_v29  ;;  %2173 = vmatprep.subr.bf16.mxu1 %v2467_v1 }
 0x10c   :  { %2180 = vmatpush3.bf16.msra.mxu0 %v2347_v30  ;;  %2183 = vmatprep.mubr.msk.bf16.mxu0 %vm2468_vm0, %v2467_v1 }
 0x10d   :  { %2181 = vmatprep.subr.bf16.mxu0 %v2467_v1 }
 0x110   :  { %2182 = vmatpush3.bf16.msra.mxu0 %v2348_v31 }
 0x111   :  { %2195 = vmatprep.subr.bf16.mxu0 %v2467_v1 }
 0x113   :  { %2184 = vmatmul.mubr.msk.bf16.vlgmr.msra.gmra.mrb[16].mxu0 %vm326_vm7, %v248_v13 }
 0x114   :  { %2196 = vmatpush3.bf16.msra.mxu0 %v2349_v32  ;;  %2199 = vmatprep.mubr.msk.bf16.mxu0 %vm2468_vm0, %v2467_v1 }
 0x115   :  { %2197 = vmatprep.subr.bf16.mxu0 %v2467_v1 }
 0x118   :  { %2198 = vmatpush3.bf16.msra.mxu0 %v2350_v33 }
 0x119   :  { %2211 = vmatprep.subr.bf16.mxu0 %v2467_v1 }
 0x11b   :  { %2200 = vmatmul.mubr.msk.bf16.vlgmr.msra.gmra.mrb[20].mxu0 %vm326_vm7, %v2590_v29 }
 0x11c   :  { %2215 = vmatprep.mubr.msk.bf16.mxu0 %vm2468_vm0, %v2467_v1  ;;  %2212 = vmatpush3.bf16.msra.mxu0 %v2353_v56 }
 0x11d   :  { %2213 = vmatprep.subr.bf16.mxu0 %v2467_v1 }
 0x120   :  { %2214 = vmatpush3.bf16.msra.mxu0 %v2354_v57 }
 0x121   :  { %2227 = vmatprep.subr.bf16.mxu0 %v2467_v1 }
 0x1d6   :  { %v364_v35 = vpop.f32.mrb[8].mxu0 }
 0x1d7   :  { %v298_v36 = vpop.f32.mrb[4].mxu1  ;;  %v2155_v37 = vpop.f32.mrb[9].mxu0 }
 0x1d8   :  { %v2147_v38 = vpop.f32.mrb[5].mxu1  ;;  %v367_v39 = vpop.f32.mrb[10].mxu0 }
 0x1d9   :  { %v301_v40 = vpop.f32.mrb[6].mxu1  ;;  %v2156_v41 = vpop.f32.mrb[11].mxu0 }
 0x1da   :  { %v305_v42 = vpack.c.bf16 %v301_v40, %v298_v36  ;;  %v2148_v43 = vpop.f32.mrb[7].mxu1 }
 0x1dc   :  { %2162 = vmatmul.mubr.msk.bf16.vlgmr.msra.gmra.mrb[8].mxu1 %vm326_vm7, %v305_v42 }
 0x1dd   :  { %2175 = vmatprep.mubr.msk.bf16.mxu1 %vm2468_vm0, %v2467_v1 }
 0x1de   :  { %v480_v44 = vpop.f32.mrb[12].mxu0 }
 0x1df   :  { %v2171_v45 = vpop.f32.mrb[13].mxu0  ;;  %v489_v62 = vrot.slane %v480_v44, %v2640_v60 }
 0x1e0   :  { %v483_v46 = vpop.f32.mrb[14].mxu0 }
 0x1e1   :  { %v2172_v47 = vpop.f32.mrb[15].mxu0 }
 0x1e6   :  { %v2628_v48 = vpop.f32.mrb[16].mxu0 }
 0x1e7   :  { %v2185_v49 = vpop.f32.mrb[17].mxu0 }
 0x1e8   :  { %v633_v50 = vpop.f32.mrb[18].mxu0 }
 0x1e9   :  { %v2186_v51 = vpop.f32.mrb[19].mxu0 }
 0x1ea   :  { %v2657_v51 = vld [vmem:[%s2920_s0 + $0x14] sm:$0xf] }
 0x1ee   :  { %v2630_v52 = vpop.f32.mrb[20].mxu0 }
 0x1ef   :  { %v2201_v53 = vpop.f32.mrb[21].mxu0 }
 0x1f0   :  { %v744_v54 = vpop.f32.mrb[22].mxu0  ;;  %v2355_v53 = vld [vmem:[%s2920_s0 + $0x60] sm:$0xff]  }
 0x1f1   :  { %v2202_v55 = vpop.f32.mrb[23].mxu0 }
 0x2af   :  { %v420_v61 = vpop.f32.mrb[8].mxu1 }
 0x2b0   :  { %v421_v63 = vadd.f32 %v420_v61, %v364_v35  ;;  %v2163_v0 = vpop.f32.mrb[9].mxu1 }
 0x2b1   :  { %v423_v3 = vpop.f32.mrb[10].mxu1 }
 0x2b2   :  { %v490_v4 = vadd.f32 %v489_v62, %v421_v63  ;;  %v424_v5 = vadd.f32 %v423_v3, %v367_v39  ;;  %v2164_v6 = vpop.f32.mrb[11].mxu1 }
 0x2b4   :  { %v497_v7 = vadd.f32 %v1988_v2, %v490_v4  ;;  %v491_v8 = vadd.f32 %v489_v62, %v424_v5  ;;  %v2356_v62 = vld [vmem:[%s2920_s0 + $0x68] sm:$0xff]  }
 0x2b6   :  { %v501_v10 = vand.u32 2147483647, %v497_v7  ;;  %v498_v11 = vadd.f32 %v1988_v2, %v491_v8  ;;  %v499_v36 = vmax.f32 %v497_v7, 0.0 }
 0x2b8   :  { %v503_v12 = vsub.f32 0.0, %v501_v10  ;;  %v502_v15 = vand.u32 2147483647, %v498_v11  ;;  %v500_v41 = vmax.f32 %v498_v11, 0.0  ;;  %v2357_v10 = vld [vmem:[%s2920_s0 + $0xc0] sm:$0xff]   ;;  %v2358_v11 = vld [vmem:[%s2920_s0 + $0xc8] sm:$0xff]  }
 0x2ba   :  { %v505_v13 = vmul.f32 1.442695, %v503_v12  ;;  %v504_v17 = vsub.f32 0.0, %v502_v15  ;;  %v2359_v12 = vld [vmem:[%s2920_s0 + $0xa0] sm:$0xff]   ;;  %v2360_v15 = vld [vmem:[%s2920_s0 + $0xa8] sm:$0xff]  }
 0x2bc   :  { %2399 = vpow2.f32 %v505_v13  ;;  %v507_v18 = vmul.f32 1.442695, %v504_v17  ;;  %v750_v17 = vrot.slane %v2630_v52, %v2640_v60 }
 0x2be   :  { %2401 = vpow2.f32 %v507_v18 }
 0x2c6   :  { %v2400_v19 = vpop.eup %2399 }
 0x2c7   :  { %v509_v20 = vadd.f32 1.0, %v2400_v19  ;;  %v512_v24 = vmul.f32 -0.5, %v2400_v19  ;;  %v515_v28 = vand.u32 2147483647, %v2400_v19 }
 0x2c8   :  { %v2402_v21 = vpop.eup %2401 }
 0x2c9   :  { %2403 = vlog2.f32 %v509_v20  ;;  %v518_v23 = vadd.f32 1.0, %v2402_v21  ;;  %v521_v25 = vmul.f32 -0.5, %v2402_v21  ;;  %v513_v26 = vadd.f32 1.0, %v512_v24  ;;  %v1999_v20 = vld [vmem:[%s2921_s1 + $0x30] ss:$0 sm:$0xff] }
 0x2ca   :  { %v524_v32 = vand.u32 2147483647, %v2402_v21  ;;  %vm516_vm10 = vcmp.lt.f32.partialorder %v515_v28, 0.0004427343 }
 0x2cb   :  { %2405 = vlog2.f32 %v518_v23  ;;  %v522_v30 = vadd.f32 1.0, %v521_v25  ;;  %v514_v34 = vmul.f32 %v2400_v19, %v513_v26 }
 0x2cc   :  { %vm525_vm11 = vcmp.lt.f32.partialorder %v524_v32, 0.0004427343 }
 0x2cd   :  { %v523_v39 = vmul.f32 %v2402_v21, %v522_v30 }
 0x2d3   :  { %v2404_v31 = vpop.eup %2403 }
 0x2d4   :  { %v511_v33 = vmul.f32 0.6931472, %v2404_v31 }
 0x2d5   :  { %v2406_v35 = vpop.eup %2405 }
 0x2d6   :  { %v517_v37 = vsel %vm516_vm10, %v514_v34, %v511_v33  ;;  %v520_v38 = vmul.f32 0.6931472, %v2406_v35 }
 0x2d7   :  { %v527_v40 = vadd.f32 %v517_v37, %v499_v36 }
 0x2d8   :  { %v526_v42 = vsel %vm525_vm11, %v523_v39, %v520_v38 }
 0x2d9   :  { %v528_v43 = vadd.f32 %v526_v42, %v500_v41  ;;  %v773_v44 = vsel %vm326_vm7, %v527_v40, 0.0  ;;  %v2648_v45 = vadd.f32 %v527_v40, %v2553_v14 }
 0x2db   :  { %v774_v46 = vsel %vm326_vm7, %v528_v43, 0.0  ;;  %v2652_v47 = vadd.f32 %v528_v43, %v2557_v16  ;;  %v529_v49 = vpack.c.bf16 %v528_v43, %v527_v40 }
 0x2dc   :  { %v775_v50 = vadd.f32 %v774_v46, %v773_v44 }
 0x2dd   :  { %2174 = vmatpush3.bf16.msra.mxu1 %v529_v49  ;;  %v1069_v14 = vpack.c.bf16 %v2652_v47, %v2648_v45  ;;  %v2009_v45 = vld [vmem:[%s2921_s1 + $0x40] ss:$0 sm:$0xff] }
 0x2de   :  { %v776_v54 = vrot.slane %v775_v50, 4  ;;  %2187 = vmatprep.subr.bf16.mxu1 %v2467_v1 }
 0x2e0   :  { %v777_v16 = vadd.f32 %v776_v54, %v775_v50  ;;  %2176 = vmatmul.mubr.msk.bf16.vlgmr.msra.gmra.mrb[12].mxu1 %vm32_vm1, %v2657_v51 }
 0x2e1   :  { %2188 = vmatpush3.bf16.msra.mxu1 %v2355_v53  ;;  %2191 = vmatprep.mubr.msk.bf16.mxu1 %vm2468_vm0, %v2467_v1 }
 0x2e2   :  { %v778_v55 = vrot.slane %v777_v16, 2  ;;  %2189 = vmatprep.subr.bf16.mxu1 %v2467_v1 }
 0x2e4   :  { %v779_v56 = vadd.f32 %v778_v55, %v777_v16  ;;  %v2361_v16 = vld [vmem:[%s2920_s0 + $0xb0] sm:$0xff]  }
 0x2e5   :  { %2190 = vmatpush3.bf16.msra.mxu1 %v2356_v62 }
 0x2e6   :  { %v780_v57 = vrot.slane %v779_v56, 1  ;;  %2203 = vmatprep.subr.bf16.mxu1 %v2467_v1 }
 0x2e8   :  { %v781_v58 = vadd.f32 %v780_v57, %v779_v56  ;;  %v2363_v56 = vld [vmem:[%s2920_s0 + $0xd0] sm:$0xff]   ;;  %v2364_v57 = vld [vmem:[%s2920_s0 + $0xd8] sm:$0xff]  }
 0x2ea   :  { %v782_v59 = vmul.f32 0.0625, %v781_v58  ;;  %v2366_v58 = vld [vmem:[%s2920_s0 + $0xe8] sm:$0xff]  }
 0x2ec   :  { %v791_v61 = vpack.c.bf16 %v782_v59, %v782_v59 }
 0x2ee   :  { %2216 = vmatmul.mubr.msk.bf16.vlgmr.msra.gmra.mrb[24].mxu0 %vm326_vm7, %v791_v61 }
 0x2ef   :  { %2231 = vmatprep.mubr.msk.bf16.mxu0 %vm2468_vm0, %v2467_v1  ;;  %2228 = vmatpush3.bf16.msra.mxu0 %v2357_v10 }
 0x2f0   :  { %2229 = vmatprep.subr.bf16.mxu0 %v2467_v1 }
 0x2f3   :  { %2230 = vmatpush3.bf16.msra.mxu0 %v2358_v11 }
 0x2f4   :  { %2243 = vmatprep.subr.bf16.mxu0 %v2467_v1 }
 0x3b3   :  { %v567_v63 = vpop.f32.mrb[12].mxu1 }
 0x3b4   :  { %v573_v0 = vpack.c.bf16 %v567_v63, %v567_v63  ;;  %v2177_v2 = vpop.f32.mrb[13].mxu1 }
 0x3b5   :  { %v570_v3 = vpop.f32.mrb[14].mxu1 }
 0x3b6   :  { %v2178_v4 = vpop.f32.mrb[15].mxu1  ;;  %2192 = vmatmul.mubr.msk.bf16.vlgmr.msra.gmra.mrb[16].mxu1 %vm326_vm7, %v573_v0 }
 0x3b7   :  { %2207 = vmatprep.mubr.msk.bf16.mxu1 %vm2468_vm0, %v2467_v1  ;;  %2204 = vmatpush3.bf16.msra.mxu1 %v2359_v12 }
 0x3b8   :  { %2205 = vmatprep.subr.bf16.mxu1 %v2467_v1 }
 0x3bb   :  { %2206 = vmatpush3.bf16.msra.mxu1 %v2360_v15  ;;  %v968_v15 = vld [vmem:[%s2921_s1 + $0x38] sm:$0x1] }
 0x3bc   :  { %2219 = vmatprep.subr.bf16.mxu1 %v2467_v1 }
 0x3c1   :  { %v2680_v5 = vpop.f32.mrb[24].mxu0 }
 0x3c2   :  { %v2217_v6 = vpop.f32.mrb[25].mxu0 }
 0x3c3   :  { %v908_v7 = vpop.f32.mrb[26].mxu0 }
 0x3c4   :  { %v2218_v8 = vpop.f32.mrb[27].mxu0 }
 0x489   :  { %v685_v13 = vpop.f32.mrb[16].mxu1 }
 0x48a   :  { %v686_v18 = vadd.f32 %v685_v13, %v2628_v48  ;;  %v2193_v19 = vpop.f32.mrb[17].mxu1 }
 0x48b   :  { %v688_v21 = vpop.f32.mrb[18].mxu1 }
 0x48c   :  { %v751_v23 = vadd.f32 %v750_v17, %v686_v18  ;;  %v2194_v24 = vpop.f32.mrb[19].mxu1 }
 0x48e   :  { %v757_v25 = vadd.f32 %v1999_v20, %v751_v23 }
 0x490   :  { %v759_v26 = vand.u32 2147483647, %v757_v25  ;;  %v758_v37 = vmax.f32 %v757_v25, 0.0 }
 0x492   :  { %v760_v28 = vsub.f32 0.0, %v759_v26 }
 0x494   :  { %v761_v30 = vmul.f32 1.442695, %v760_v28 }
 0x496   :  { %2407 = vpow2.f32 %v761_v30 }
 0x4a0   :  { %v2408_v31 = vpop.eup %2407 }
 0x4a1   :  { %v763_v32 = vadd.f32 1.0, %v2408_v31  ;;  %v766_v33 = vmul.f32 -0.5, %v2408_v31  ;;  %v769_v34 = vand.u32 2147483647, %v2408_v31 }
 0x4a3   :  { %2409 = vlog2.f32 %v763_v32  ;;  %v767_v52 = vadd.f32 1.0, %v766_v33  ;;  %vm770_vm12 = vcmp.lt.f32.partialorder %v769_v34, 0.0004427343 }
 0x4a5   :  { %v768_v36 = vmul.f32 %v2408_v31, %v767_v52 }
 0x4ad   :  { %v2410_v48 = vpop.eup %2409 }
 0x4ae   :  { %v765_v35 = vmul.f32 0.6931472, %v2410_v48 }
 0x4b0   :  { %v771_v38 = vsel %vm770_vm12, %v768_v36, %v765_v35 }
 0x4b1   :  { %v772_v39 = vadd.f32 %v771_v38, %v758_v37 }
 0x4b3   :  { %v783_v40 = vsel %vm326_vm7, %v772_v39, 0.0  ;;  %v985_v41 = vadd.f32 %v772_v39, %v2551_v9  ;;  %v2362_v9 = vld [vmem:[%s2920_s0 + $0xb8] sm:$0xff]  }
 0x4b4   :  { %v784_v42 = vrot.slane %v783_v40, 4 }
 0x4b5   :  { %v989_v43 = vpack.c.bf16 %v985_v41, %v985_v41 }
 0x4b6   :  { %v785_v44 = vadd.f32 %v784_v42, %v783_v40 }
 0x4b7   :  { %2232 = vmatmul.mubr.msk.bf16.vlgmr.msra.gmra.mrb[28].mxu0 %vm326_vm7, %v989_v43 }
 0x4b8   :  { %v786_v46 = vrot.slane %v785_v44, 2  ;;  %2247 = vmatprep.mubr.msk.bf16.mxu0 %vm2468_vm0, %v2467_v1 }
 0x4ba   :  { %v787_v49 = vadd.f32 %v786_v46, %v785_v44 }
 0x4bc   :  { %v788_v50 = vrot.slane %v787_v49, 1 }
 0x4be   :  { %v789_v53 = vadd.f32 %v788_v50, %v787_v49 }
 0x4c0   :  { %v790_v54 = vmul.f32 0.125, %v789_v53  ;;  %v2369_v53 = vld [vmem:[%s2920_s0 + $0xf0] sm:$0xff]  }
 0x4c2   :  { %v796_v55 = vpack.c.bf16 %v790_v54, %v790_v54 }
 0x4c4   :  { %2208 = vmatmul.mubr.msk.bf16.vlgmr.msra.gmra.mrb[20].mxu1 %vm326_vm7, %v796_v55 }
 0x4c5   :  { %2220 = vmatpush3.bf16.msra.mxu1 %v2361_v16  ;;  %2223 = vmatprep.mubr.msk.bf16.mxu1 %vm2468_vm0, %v2467_v1 }
 0x4c6   :  { %2221 = vmatprep.subr.bf16.mxu1 %v2467_v1 }
 0x4c9   :  { %2222 = vmatpush3.bf16.msra.mxu1 %v2362_v9 }
 0x4ca   :  { %2235 = vmatprep.subr.bf16.mxu1 %v2467_v1 }
 0x4cc   :  { %2224 = vmatmul.mubr.msk.bf16.vlgmr.msra.gmra.mrb[24].mxu1 %vm326_vm7, %v2590_v29  ;;  %v2365_v29 = vld [vmem:[%s2920_s0 + $0xe0] sm:$0xff]  }
 0x4cd   :  { %2236 = vmatpush3.bf16.msra.mxu1 %v2363_v56  ;;  %2239 = vmatprep.mubr.msk.bf16.mxu1 %vm2468_vm0, %v2467_v1 }
 0x4ce   :  { %2237 = vmatprep.subr.bf16.mxu1 %v2467_v1  ;;  %2244 = vmatpush3.bf16.msra.mxu0 %v2365_v29 }
 0x4cf   :  { %2245 = vmatprep.subr.bf16.mxu0 %v2467_v1 }
 0x4d1   :  { %2238 = vmatpush3.bf16.msra.mxu1 %v2364_v57 }
 0x4d2   :  { %2251 = vmatprep.subr.bf16.mxu1 %v2467_v1  ;;  %2246 = vmatpush3.bf16.msra.mxu0 %v2366_v58 }
 0x4d3   :  { %2257 = vmatprep.subr.bf16.mxu0 %v2467_v1 }
 0x4d4   :  { %2240 = vmatmul.mubr.msk.bf16.vlgmr.msra.gmra.mrb[28].mxu1 %vm326_vm7, %v1069_v14 }
 0x4d5   :  { %2253 = vmatprep.mubr.msk.bf16.mxu1 %vm2468_vm0, %v2467_v1 }
 0x58a   :  { %v1048_v47 = vpop.f32.mrb[28].mxu0 }
 0x58b   :  { %v1049_v14 = vadd.f32 %v2009_v45, %v1048_v47  ;;  %v2233_v59 = vpop.f32.mrb[29].mxu0 }
 0x58c   :  { %v1051_v61 = vpop.f32.mrb[30].mxu0 }
 0x58d   :  { %v1055_v62 = vand.u32 2147483647, %v1049_v14  ;;  %v2234_v63 = vpop.f32.mrb[31].mxu0  ;;  %v1054_v38 = vmax.f32 %v1049_v14, 0.0 }
 0x58f   :  { %v1056_v0 = vsub.f32 0.0, %v1055_v62 }
 0x591   :  { %v1057_v2 = vmul.f32 1.442695, %v1056_v0 }
 0x593   :  { %2411 = vpow2.f32 %v1057_v2 }
 0x597   :  { %v850_v3 = vpop.f32.mrb[20].mxu1 }
 0x598   :  { %v906_v4 = vadd.f32 %v2680_v5, %v850_v3  ;;  %v2209_v6 = vpop.f32.mrb[21].mxu1  ;;  %v2013_v5 = vld [vmem:[%s2921_s1 + $0x48] ss:$0 sm:$0xff] }
 0x599   :  { %v853_v7 = vpop.f32.mrb[22].mxu1 }
 0x59a   :  { %v2210_v8 = vpop.f32.mrb[23].mxu1 }
 0x59d   :  { %v2412_v10 = vpop.eup %2411 }
 0x59e   :  { %v1059_v11 = vadd.f32 1.0, %v2412_v10  ;;  %v1062_v21 = vmul.f32 -0.5, %v2412_v10  ;;  %v1065_v28 = vand.u32 2147483647, %v2412_v10 }
 0x59f   :  { %v961_v12 = vpop.f32.mrb[24].mxu1 }
 0x5a0   :  { %2413 = vlog2.f32 %v1059_v11  ;;  %v967_v13 = vadd.f32 %v961_v12, %v906_v4  ;;  %v2225_v17 = vpop.f32.mrb[25].mxu1  ;;  %v1063_v25 = vadd.f32 1.0, %v1062_v21  ;;  %vm1066_vm13 = vcmp.lt.f32.partialorder %v1065_v28, 0.0004427343  ;;  %v2367_v12 = vld [vmem:[%s2920_s0 + $0x100] sm:$0xff]   ;;  %v2371_v28 = vld [vmem:[%s2920_s0 + $0x110] sm:$0xff]  }
 0x5a1   :  { %v964_v18 = vpop.f32.mrb[26].mxu1 }
 0x5a2   :  { %v969_v19 = vadd.f32 %v968_v15, %v967_v13  ;;  %v2226_v20 = vpop.f32.mrb[27].mxu1  ;;  %v1064_v37 = vmul.f32 %v2412_v10, %v1063_v25 }
 0x5a4   :  { %v971_v23 = vand.u32 2147483647, %v969_v19  ;;  %v970_v62 = vmax.f32 %v969_v19, 0.0 }
 0x5a6   :  { %v972_v24 = vsub.f32 0.0, %v971_v23  ;;  %v2368_v23 = vld [vmem:[%s2920_s0 + $0x108] sm:$0xff]  }
 0x5a7   :  { %v1128_v26 = vpop.f32.mrb[28].mxu1 }
 0x5a8   :  { %v973_v30 = vmul.f32 1.442695, %v972_v24  ;;  %v2756_v31 = vadd.f32 %v2013_v5, %v1128_v26  ;;  %v2241_v32 = vpop.f32.mrb[29].mxu1  ;;  %v2370_v26 = vld [vmem:[%s2920_s0 + $0xf8] sm:$0xff]  }
 0x5a9   :  { %v1131_v33 = vpop.f32.mrb[30].mxu1 }
 0x5aa   :  { %v2414_v52 = vpop.eup %2413  ;;  %2415 = vpow2.f32 %v973_v30  ;;  %v1137_v34 = vand.u32 2147483647, %v2756_v31  ;;  %v2759_v48 = vadd.f32 %v2013_v5, %v1131_v33  ;;  %v2242_v35 = vpop.f32.mrb[31].mxu1  ;;  %v1135_v20 = vmax.f32 %v2756_v31, 0.0  ;;  %v2372_v30 = vld [vmem:[%s2920_s0 + $0x118] sm:$0xff]  }
 0x5ab   :  { %v1061_v36 = vmul.f32 0.6931472, %v2414_v52 }
 0x5ac   :  { %v1139_v39 = vsub.f32 0.0, %v1137_v34  ;;  %v1138_v40 = vand.u32 2147483647, %v2759_v48  ;;  %v1136_v21 = vmax.f32 %v2759_v48, 0.0  ;;  %v1170_v48 = vld [vmem:[%s2921_s1 + $0x50] sm:$0x1] }
 0x5ad   :  { %v1067_v41 = vsel %vm1066_vm13, %v1064_v37, %v1061_v36 }
 0x5ae   :  { %v2762_v42 = vadd.f32 %v1067_v41, %v1054_v38  ;;  %v1141_v43 = vmul.f32 1.442695, %v1139_v39  ;;  %v1140_v44 = vsub.f32 0.0, %v1138_v40 }
 0x5b0   :  { %2417 = vpow2.f32 %v1141_v43  ;;  %v1143_v46 = vmul.f32 1.442695, %v1140_v44  ;;  %v2766_v49 = vpack.c.bf16 %v2762_v42, %v2762_v42 }
 0x5b2   :  { %2419 = vpow2.f32 %v1143_v46  ;;  %v1245_v50 = vsel %vm260_vm6, %v2766_v49, 0 }
 0x5b3   :  { %2252 = vmatpush3.bf16.msra.mxu1 %v1245_v50 }
 0x5b4   :  { %v2416_v54 = vpop.eup %2415  ;;  %2265 = vmatprep.subr.bf16.mxu1 %v2467_v1 }
 0x5b5   :  { %v975_v16 = vadd.f32 1.0, %v2416_v54  ;;  %v978_v9 = vmul.f32 -0.5, %v2416_v54  ;;  %v981_v45 = vand.u32 2147483647, %v2416_v54 }
 0x5b6   :  { %2254 = vmatmul.mubr.msk.bf16.vlgmr.msra.gmra.mrb[32].mxu1 %vm256_vm9, %v2567_v22 }
 0x5b7   :  { %2421 = vlog2.f32 %v975_v16  ;;  %2266 = vmatpush3.bf16.msra.mxu1 %v2369_v53  ;;  %2269 = vmatprep.mubr.msk.bf16.mxu1 %vm2468_vm0, %v2467_v1  ;;  %v979_v58 = vadd.f32 1.0, %v978_v9  ;;  %vm982_vm14 = vcmp.lt.f32.partialorder %v981_v45, 0.0004427343 }
 0x5b8   :  { %2267 = vmatprep.subr.bf16.mxu1 %v2467_v1 }
 0x5b9   :  { %v980_v22 = vmul.f32 %v2416_v54, %v979_v58 }
 0x5ba   :  { %v2418_v55 = vpop.eup %2417 }
 0x5bb   :  { %v1145_v56 = vadd.f32 1.0, %v2418_v55  ;;  %v1148_v47 = vmul.f32 -0.5, %v2418_v55  ;;  %v1151_v3 = vand.u32 2147483647, %v2418_v55  ;;  %2268 = vmatpush3.bf16.msra.mxu1 %v2370_v26 }
 0x5bc   :  { %v2420_v57 = vpop.eup %2419  ;;  %2281 = vmatprep.subr.bf16.mxu1 %v2467_v1 }
 0x5bd   :  { %2423 = vlog2.f32 %v1145_v56  ;;  %v1154_v29 = vadd.f32 1.0, %v2420_v57  ;;  %v1157_v61 = vmul.f32 -0.5, %v2420_v57  ;;  %v1149_v0 = vadd.f32 1.0, %v1148_v47 }
 0x5be   :  { %v1160_v8 = vand.u32 2147483647, %v2420_v57  ;;  %vm1152_vm15 = vcmp.lt.f32.partialorder %v1151_v3, 0.0004427343 }
 0x5bf   :  { %2425 = vlog2.f32 %v1154_v29  ;;  %v1158_v4 = vadd.f32 1.0, %v1157_v61  ;;  %v1150_v11 = vmul.f32 %v2418_v55, %v1149_v0  ;;  %v2374_v61 = vld [vmem:[%s2920_s0 + $0x138] sm:$0xff]  }
 0x5c0   :  { %vm1161_vm3 = vcmp.lt.f32.partialorder %v1160_v8, 0.0004427343 }
 0x5c1   :  { %v2422_v14 = vpop.eup %2421  ;;  %v1159_v19 = vmul.f32 %v2420_v57, %v1158_v4 }
 0x5c2   :  { %v977_v59 = vmul.f32 0.6931472, %v2422_v14 }
 0x5c4   :  { %v983_v63 = vsel %vm982_vm14, %v980_v22, %v977_v59  ;;  %v2373_v59 = vld [vmem:[%s2920_s0 + $0x130] sm:$0xff]  }
 0x5c5   :  { %v984_v2 = vadd.f32 %v983_v63, %v970_v62  ;;  %v2375_v62 = vld [vmem:[%s2920_s0 + $0x140] sm:$0xff]   ;;  %v2376_v63 = vld [vmem:[%s2920_s0 + $0x148] sm:$0xff]  }
 0x5c7   :  { %v2424_v6 = vpop.eup %2423  ;;  %v988_v7 = vadd.f32 %v984_v2, %v2576_v27 }
 0x5c8   :  { %v1147_v10 = vmul.f32 0.6931472, %v2424_v6 }
 0x5c9   :  { %v2426_v15 = vpop.eup %2425  ;;  %v1165_v13 = vpack.c.bf16 %v988_v7, %v988_v7 }
 0x5ca   :  { %v1153_v17 = vsel %vm1152_vm15, %v1150_v11, %v1147_v10  ;;  %v1156_v18 = vmul.f32 0.6931472, %v2426_v15  ;;  %v2030_v11 = vld [vmem:[%s2921_s1 + $0x58] ss:$0 sm:$0xff] }
 0x5cb   :  { %2248 = vmatmul.mubr.msk.bf16.vlgmr.msra.gmra.mrb[32].mxu0 %vm326_vm7, %v1165_v13  ;;  %v1163_v5 = vadd.f32 %v1153_v17, %v1135_v20 }
 0x5cc   :  { %v1162_v27 = vsel %vm1161_vm3, %v1159_v19, %v1156_v18  ;;  %2258 = vmatpush3.bf16.msra.mxu0 %v2367_v12  ;;  %2261 = vmatprep.mubr.msk.bf16.mxu0 %vm2468_vm0, %v2467_v1 }
 0x5cd   :  { %v1164_v24 = vadd.f32 %v1162_v27, %v1136_v21  ;;  %2259 = vmatprep.subr.bf16.mxu0 %v2467_v1 }
 0x5cf   :  { %v1242_v25 = vpack.c.bf16 %v1164_v24, %v1163_v5 }
 0x5d0   :  { %2260 = vmatpush3.bf16.msra.mxu0 %v2368_v23 }
 0x5d1   :  { %2273 = vmatprep.subr.bf16.mxu0 %v2467_v1 }
 0x5d3   :  { %2262 = vmatmul.mubr.msk.bf16.vlgmr.msra.gmra.mrb[36].mxu0 %vm326_vm7, %v1242_v25 }
 0x5d4   :  { %2277 = vmatprep.mubr.msk.bf16.mxu0 %vm2468_vm0, %v2467_v1  ;;  %2274 = vmatpush3.bf16.msra.mxu0 %v2371_v28 }
 0x5d5   :  { %2275 = vmatprep.subr.bf16.mxu0 %v2467_v1 }
 0x5d8   :  { %2276 = vmatpush3.bf16.msra.mxu0 %v2372_v30 }
 0x5d9   :  { %2287 = vmatprep.subr.bf16.mxu0 %v2467_v1 }
 0x689   :  { %v1281_v31 = vpop.f32.mrb[32].mxu1 }
 0x68a   :  { %v2255_v32 = vpop.f32.mrb[33].mxu1 }
 0x68b   :  { %v1284_v33 = vpop.f32.mrb[34].mxu1 }
 0x68c   :  { %v1288_v52 = vpack.c.bf16 %v1284_v33, %v1281_v31  ;;  %v2256_v34 = vpop.f32.mrb[35].mxu1 }
 0x68e   :  { %2270 = vmatmul.mubr.msk.bf16.vlgmr.msra.gmra.mrb[36].mxu1 %vm326_vm7, %v1288_v52 }
 0x68f   :  { %2283 = vmatprep.mubr.msk.bf16.mxu1 %vm2468_vm0, %v2467_v1 }
 0x69e   :  { %v1220_v35 = vpop.f32.mrb[32].mxu0 }
 0x69f   :  { %v1221_v36 = vadd.f32 %v1220_v35, %v1170_v48  ;;  %v2249_v37 = vpop.f32.mrb[33].mxu0 }
 0x6a0   :  { %v1223_v38 = vpop.f32.mrb[34].mxu0 }
 0x6a1   :  { %v1227_v39 = vand.u32 2147483647, %v1221_v36  ;;  %v2250_v40 = vpop.f32.mrb[35].mxu0  ;;  %v1226_v45 = vmax.f32 %v1221_v36, 0.0 }
 0x6a3   :  { %v1228_v41 = vsub.f32 0.0, %v1227_v39 }
 0x6a5   :  { %v1229_v43 = vmul.f32 1.442695, %v1228_v41 }
 0x6a6   :  { %v1346_v44 = vpop.f32.mrb[36].mxu0 }
 0x6a7   :  { %2427 = vpow2.f32 %v1229_v43  ;;  %v2263_v46 = vpop.f32.mrb[37].mxu0 }
 0x6a8   :  { %v1349_v50 = vpop.f32.mrb[38].mxu0 }
 0x6a9   :  { %v2264_v53 = vpop.f32.mrb[39].mxu0 }
 0x6b1   :  { %v2428_v54 = vpop.eup %2427 }
 0x6b2   :  { %v1231_v16 = vadd.f32 1.0, %v2428_v54  ;;  %v1234_v55 = vmul.f32 -0.5, %v2428_v54  ;;  %v1237_v56 = vand.u32 2147483647, %v2428_v54 }
 0x6b4   :  { %2429 = vlog2.f32 %v1231_v16  ;;  %v1235_v9 = vadd.f32 1.0, %v1234_v55  ;;  %vm1238_vm4 = vcmp.lt.f32.partialorder %v1237_v56, 0.0004427343 }
 0x6b6   :  { %v1236_v58 = vmul.f32 %v2428_v54, %v1235_v9 }
 0x6be   :  { %v2430_v57 = vpop.eup %2429 }
 0x6bf   :  { %v1233_v29 = vmul.f32 0.6931472, %v2430_v57 }
 0x6c1   :  { %v1239_v47 = vsel %vm1238_vm4, %v1236_v58, %v1233_v29 }
 0x6c2   :  { %v1240_v14 = vadd.f32 %v1239_v47, %v1226_v45  ;;  %v2377_v47 = vld [vmem:[%s2920_s0 + $0x120] sm:$0xff]  }
 0x6c4   :  { %v1243_v22 = vpack.c.bf16 %v1240_v14, %v1240_v14  ;;  %v2378_v14 = vld [vmem:[%s2920_s0 + $0x128] sm:$0xff]  }
 0x6c6   :  { %2278 = vmatmul.mubr.msk.bf16.vlgmr.msra.gmra.mrb[40].mxu0 %vm326_vm7, %v1243_v22 }
 0x6c7   :  { %2288 = vmatpush3.bf16.msra.mxu0 %v2373_v59  ;;  %2291 = vmatprep.mubr.msk.bf16.mxu0 %vm2468_vm0, %v2467_v1 }
 0x6c8   :  { %2289 = vmatprep.subr.bf16.mxu0 %v2467_v1 }
 0x6cb   :  { %2290 = vmatpush3.bf16.msra.mxu0 %v2374_v61 }
 0x6cc   :  { %2303 = vmatprep.subr.bf16.mxu0 %v2467_v1 }
 0x6ce   :  { %2292 = vmatmul.mubr.msk.bf16.vlgmr.msra.gmra.mrb[44].mxu0 %vm326_vm7, %v2766_v49 }
 0x6cf   :  { %2304 = vmatpush3.bf16.msra.mxu0 %v2375_v62  ;;  %2307 = vmatprep.mubr.msk.bf16.mxu0 %vm2468_vm0, %v2467_v1 }
 0x6d0   :  { %2305 = vmatprep.subr.bf16.mxu0 %v2467_v1 }
 0x6d3   :  { %2306 = vmatpush3.bf16.msra.mxu0 %v2376_v63  ;;  %v2379_v63 = vld [vmem:[%s2920_s0 + $0x180] sm:$0xff]  }
 0x6d4   :  { %2319 = vmatprep.subr.bf16.mxu0 %v2467_v1 }
 0x6d6   :  { %2308 = vmatmul.mubr.msk.bf16.vlgmr.msra.gmra.mrb[48].mxu0 %vm326_vm7, %v1243_v22 }
 0x6d7   :  { %2323 = vmatprep.mubr.msk.bf16.mxu0 %vm2468_vm0, %v2467_v1 }
 0x761   :  { %v1402_v0 = vpop.f32.mrb[36].mxu1 }
 0x762   :  { %v1403_v49 = vadd.f32 %v1402_v0, %v1346_v44  ;;  %v2271_v2 = vpop.f32.mrb[37].mxu1  ;;  %v2380_v0 = vld [vmem:[%s2920_s0 + $0x190] sm:$0xff]  }
 0x763   :  { %v1405_v3 = vpop.f32.mrb[38].mxu1  ;;  %2320 = vmatpush3.bf16.msra.mxu0 %v2380_v0  ;;  %v2382_v2 = vld [vmem:[%s2920_s0 + $0x198] sm:$0xff]  }
 0x764   :  { %v1406_v4 = vadd.f32 %v1405_v3, %v1349_v50  ;;  %v2272_v6 = vpop.f32.mrb[39].mxu1  ;;  %2321 = vmatprep.subr.bf16.mxu0 %v2467_v1 }
 0x767   :  { %2322 = vmatpush3.bf16.msra.mxu0 %v2382_v2 }
 0x799   :  { %v1462_v7 = vpop.f32.mrb[40].mxu0 }
 0x79a   :  { %v1471_v8 = vrot.slane %v1462_v7, %v2640_v60  ;;  %v2279_v10 = vpop.f32.mrb[41].mxu0 }
 0x79b   :  { %v1465_v12 = vpop.f32.mrb[42].mxu0 }
 0x79c   :  { %v1472_v15 = vadd.f32 %v1471_v8, %v1403_v49  ;;  %v1473_v13 = vadd.f32 %v1471_v8, %v1406_v4  ;;  %v2280_v17 = vpop.f32.mrb[43].mxu0  ;;  %v2381_v49 = vld [vmem:[%s2920_s0 + $0x188] sm:$0xff]   ;;  %v2041_v8 = vld [vmem:[%s2921_s1 + $0x60] ss:$0 sm:$0xff] }
 0x79e   :  { %v1479_v18 = vadd.f32 %v2030_v11, %v1472_v15  ;;  %v1480_v19 = vadd.f32 %v2030_v11, %v1473_v13 }
 0x7a0   :  { %v1483_v20 = vand.u32 2147483647, %v1479_v18  ;;  %v1484_v21 = vand.u32 2147483647, %v1480_v19  ;;  %v1481_v54 = vmax.f32 %v1479_v18, 0.0  ;;  %v1482_v9 = vmax.f32 %v1480_v19, 0.0 }
 0x7a1   :  { %v2844_v27 = vpop.f32.mrb[44].mxu0 }
 0x7a2   :  { %v1485_v23 = vsub.f32 0.0, %v1483_v20  ;;  %v1486_v5 = vsub.f32 0.0, %v1484_v21  ;;  %v2293_v24 = vpop.f32.mrb[45].mxu0 }
 0x7a3   :  { %v1612_v25 = vpop.f32.mrb[46].mxu0 }
 0x7a4   :  { %v1487_v26 = vmul.f32 1.442695, %v1485_v23  ;;  %v1489_v28 = vmul.f32 1.442695, %v1486_v5  ;;  %v2294_v30 = vpop.f32.mrb[47].mxu0 }
 0x7a5   :  { %v1898_v30 = vld [vmem:[%s2920_s0 + $0x18] sm:$0x3] }
 0x7a6   :  { %2431 = vpow2.f32 %v1487_v26 }
 0x7a7   :  { %2433 = vpow2.f32 %v1489_v28 }
 0x7a9   :  { %v2846_v31 = vpop.f32.mrb[48].mxu0 }
 0x7aa   :  { %v2309_v32 = vpop.f32.mrb[49].mxu0  ;;  %v1729_v4 = vrot.slane %v2846_v31, %v2640_v60 }
 0x7ab   :  { %v1723_v33 = vpop.f32.mrb[50].mxu0 }
 0x7ac   :  { %v2310_v52 = vpop.f32.mrb[51].mxu0  ;;  %v1903_v33 = vsel %vm189_vm2, %v1898_v30, 0 }
 0x7ad   :  { %v1897_v52 = vld [vmem:[%s2920_s0 + $0x1a0] sm:$0x1] }
 0x7b0   :  { %v2432_v34 = vpop.eup %2431 }
 0x7b1   :  { %v2434_v48 = vpop.eup %2433  ;;  %v1491_v35 = vadd.f32 1.0, %v2432_v34  ;;  %v1494_v37 = vmul.f32 -0.5, %v2432_v34  ;;  %v1497_v40 = vand.u32 2147483647, %v2432_v34 }
 0x7b2   :  { %v1500_v36 = vadd.f32 1.0, %v2434_v48  ;;  %v1503_v38 = vmul.f32 -0.5, %v2434_v48  ;;  %v1506_v43 = vand.u32 2147483647, %v2434_v48 }
 0x7b3   :  { %2435 = vlog2.f32 %v1491_v35  ;;  %v1495_v39 = vadd.f32 1.0, %v1494_v37  ;;  %vm1498_vm5 = vcmp.lt.f32.partialorder %v1497_v40, 0.0004427343 }
 0x7b4   :  { %2437 = vlog2.f32 %v1500_v36  ;;  %v1504_v41 = vadd.f32 1.0, %v1503_v38  ;;  %vm1507_vm6 = vcmp.lt.f32.partialorder %v1506_v43, 0.0004427343 }
 0x7b5   :  { %v1496_v53 = vmul.f32 %v2432_v34, %v1495_v39 }
 0x7b6   :  { %v1505_v55 = vmul.f32 %v2434_v48, %v1504_v41 }
 0x7bd   :  { %v2436_v44 = vpop.eup %2435 }
 0x7be   :  { %v2438_v46 = vpop.eup %2437  ;;  %v1493_v50 = vmul.f32 0.6931472, %v2436_v44 }
 0x7bf   :  { %v1502_v16 = vmul.f32 0.6931472, %v2438_v46  ;;  %v1869_v46 = vld [vmem:[%s2921_s1] sm:$0xff] }
 0x7c0   :  { %v1499_v56 = vsel %vm1498_vm5, %v1496_v53, %v1493_v50 }
 0x7c1   :  { %v1508_v57 = vsel %vm1507_vm6, %v1505_v55, %v1502_v16  ;;  %v1509_v29 = vadd.f32 %v1499_v56, %v1481_v54  ;;  %v1870_v54 = vld [vmem:[%s2921_s1 + $0x8] sm:$0xff] }
 0x7c2   :  { %v1510_v58 = vadd.f32 %v1508_v57, %v1482_v9 }
 0x7c4   :  { %v1511_v45 = vpack.c.bf16 %v1510_v58, %v1509_v29 }
 0x7c6   :  { %2282 = vmatpush3.bf16.msra.mxu1 %v1511_v45 }
 0x7c7   :  { %2295 = vmatprep.subr.bf16.mxu1 %v2467_v1 }
 0x7c9   :  { %2284 = vmatmul.mubr.msk.bf16.vlgmr.msra.gmra.mrb[40].mxu1 %vm32_vm1, %v2657_v51 }
 0x7ca   :  { %2296 = vmatpush3.bf16.msra.mxu1 %v2377_v47  ;;  %2299 = vmatprep.mubr.msk.bf16.mxu1 %vm2468_vm0, %v2467_v1 }
 0x7cb   :  { %2297 = vmatprep.subr.bf16.mxu1 %v2467_v1 }
 0x7ce   :  { %2298 = vmatpush3.bf16.msra.mxu1 %v2378_v14 }
 0x7cf   :  { %2311 = vmatprep.subr.bf16.mxu1 %v2467_v1 }
 0x89c   :  { %v1546_v59 = vpop.f32.mrb[40].mxu1 }
 0x89d   :  { %v1552_v22 = vpack.c.bf16 %v1546_v59, %v1546_v59  ;;  %v2285_v61 = vpop.f32.mrb[41].mxu1 }
 0x89e   :  { %v1549_v62 = vpop.f32.mrb[42].mxu1 }
 0x89f   :  { %2300 = vmatmul.mubr.msk.bf16.vlgmr.msra.gmra.mrb[44].mxu1 %vm326_vm7, %v1552_v22  ;;  %v2286_v51 = vpop.f32.mrb[43].mxu1 }
 0x8a0   :  { %2315 = vmatprep.mubr.msk.bf16.mxu1 %vm2468_vm0, %v2467_v1  ;;  %2312 = vmatpush3.bf16.msra.mxu1 %v2379_v63 }
 0x8a1   :  { %2313 = vmatprep.subr.bf16.mxu1 %v2467_v1 }
 0x8a4   :  { %2314 = vmatpush3.bf16.msra.mxu1 %v2381_v49 }
 0x8a5   :  { %2327 = vmatprep.subr.bf16.mxu1 %v2467_v1 }
 0x972   :  { %v1664_v3 = vpop.f32.mrb[44].mxu1 }
 0x973   :  { %v1665_v6 = vadd.f32 %v1664_v3, %v2844_v27  ;;  %v2301_v7 = vpop.f32.mrb[45].mxu1 }
 0x974   :  { %v1667_v10 = vpop.f32.mrb[46].mxu1 }
 0x975   :  { %v1730_v11 = vadd.f32 %v1729_v4, %v1665_v6  ;;  %v2302_v12 = vpop.f32.mrb[47].mxu1 }
 0x977   :  { %v1736_v15 = vadd.f32 %v2041_v8, %v1730_v11 }
 0x979   :  { %v1738_v13 = vand.u32 2147483647, %v1736_v15  ;;  %v1737_v25 = vmax.f32 %v1736_v15, 0.0 }
 0x97b   :  { %v1739_v17 = vsub.f32 0.0, %v1738_v13 }
 0x97d   :  { %v1740_v18 = vmul.f32 1.442695, %v1739_v17 }
 0x97f   :  { %2439 = vpow2.f32 %v1740_v18 }
 0x989   :  { %v2440_v19 = vpop.eup %2439 }
 0x98a   :  { %v1742_v20 = vadd.f32 1.0, %v2440_v19  ;;  %v1745_v21 = vmul.f32 -0.5, %v2440_v19  ;;  %v1748_v23 = vand.u32 2147483647, %v2440_v19 }
 0x98c   :  { %2441 = vlog2.f32 %v1742_v20  ;;  %v1746_v60 = vadd.f32 1.0, %v1745_v21  ;;  %vm1749_vm1 = vcmp.lt.f32.partialorder %v1748_v23, 0.0004427343 }
 0x98e   :  { %v1747_v24 = vmul.f32 %v2440_v19, %v1746_v60 }
 0x996   :  { %v2442_v27 = vpop.eup %2441 }
 0x997   :  { %v1744_v5 = vmul.f32 0.6931472, %v2442_v27 }
 0x999   :  { %v1750_v26 = vsel %vm1749_vm1, %v1747_v24, %v1744_v5 }
 0x99a   :  { %v1751_v28 = vadd.f32 %v1750_v26, %v1737_v25 }
 0x99c   :  { %v1752_v31 = vadd.f32 %v1751_v28, %v2762_v42  ;;  %v1947_v42 = vld [vmem:[%s2921_s1 + $0x70] sm:$0x1]  ;;  %s2470_s1 = smov [#allocation2]  }
 0x99d   :  { %1950 = vperm.xlu1 %2338, %v1947_v42   ;;  %s1962_s22 = sshll.u32 %s2470_s1, 4  ;;  %s1963_s22 = int_to_ptr.vmem [resolvable:$true] %s1962_s22 }
 0x99e   :  { %v1753_v32 = vpack.c.bf16 %v1752_v31, %v1752_v31  ;;  %s2443_s23 = scalar_lea.vmem %s1963_s22, 16  ;;  %s2447_s24 = scalar_lea.vmem %s1963_s22, 32 }
 0x99f   :  { %p2444_p0 = scmp.ne.s32.totalorder %s1963_s22, %s2443_s23  ;;  %p2448_p1 = scmp.lt.s32.totalorder %s1963_s22, %s1963_s22 }
 0x9a0   :  { %2316 = vmatmul.mubr.msk.bf16.vlgmr.msra.gmra.mrb[48].mxu1 %vm326_vm7, %v1753_v32  ;;  %2324 = vmatmul.mubr.msk.bf16.vlgmr.msra.gmra.mrb[52].mxu0 %vm326_vm7, %v1753_v32  ;;  %p2449_p2 = scmp.lt.s32.totalorder %s2447_s24, %s2443_s23 }
 0x9a1   :  { %2328 = vmatpush3.bf16.msra.mxu1 %v1903_v33  ;;  %2329 = vmatprep.mubr.msk.bf16.mxu1 %vm2468_vm0, %v2467_v1  ;;  %vm1954_vm0 = vcmask 57344  }
 0x9a2   :  { %p2450_p3 = por %p2449_p2, %p2448_p1 }
 0x9a4   :  { %p2451_p4 = pnand %p2450_p3, %p2444_p0 }
 0x9a8   :  { %2330 = vmatmul.mubr.msk.bf16.vlgmr.msra.gmra.mrb[52].mxu1 %vm185_vm8, %v1897_v52 }
 0xa1c   :  { %v1951_v49 = vpop.permute.xlu1 %1950 }
 0xa73   :  { %v1807_v34 = vpop.f32.mrb[48].mxu1  ;;  %v1863_v48 = vpop.f32.mrb[52].mxu0 }
 0xa74   :  { %1873 = vperm.xlu0 %2337, %v1807_v34   ;;  %v2317_v35 = vpop.f32.mrb[49].mxu1  ;;  %v2325_v36 = vpop.f32.mrb[53].mxu0 }
 0xa75   :  { %v1810_v37 = vpop.f32.mrb[50].mxu1  ;;  %v1866_v38 = vpop.f32.mrb[54].mxu0 }
 0xa76   :  { %v2318_v39 = vpop.f32.mrb[51].mxu1  ;;  %v2326_v1 = vpop.f32.mrb[55].mxu0 }
 0xa78   :  { %1886 = vperm.xlu0 %2337, %v1863_v48  }
 0xa7b   :  { %v1939_v40 = vpop.f32.mrb[52].mxu1 }
 0xa7c   :  { %v2331_v41 = vpop.f32.mrb[53].mxu1 }
 0xa7d   :  { %v1942_v43 = vpop.f32.mrb[54].mxu1 }
 0xa7e   :  { %v2332_v44 = vpop.f32.mrb[55].mxu1 }
 0xaf3   :  { %v1874_v50 = vpop.permute.xlu0 %1873 }
 0xaf4   :  { %v1876_v53 = vmul.f32 %v1874_v50, %v1869_v46 }
 0xaf6   :  { %v1877_v16 = vsel %vm256_vm9, %v1876_v53, 0.0 }
 0xaf7   :  { %v1878_v55 = vrot.slane %v1877_v16, 4  ;;  %v1887_v9 = vpop.permute.xlu0 %1886 }
 0xaf8   :  { %v1889_v56 = vmul.f32 %v1887_v9, %v1870_v54 }
 0xaf9   :  { %v1879_v57 = vadd.f32 %v1878_v55, %v1877_v16 }
 0xafa   :  { %v1890_v29 = vsel %vm256_vm9, %v1889_v56, 0.0 }
 0xafb   :  { %v1880_v58 = vrot.slane %v1879_v57, 2  ;;  %v1891_v45 = vrot.slane %v1890_v29, 4 }
 0xafd   :  { %v1881_v47 = vadd.f32 %v1880_v58, %v1879_v57  ;;  %v1892_v14 = vadd.f32 %v1891_v45, %v1890_v29 }
 0xaff   :  { %v1893_v59 = vrot.slane %v1892_v14, 2  ;;  %v1882_v61 = vrot.slane %v1881_v47, 1 }
 0xb01   :  { %v1894_v22 = vadd.f32 %v1893_v59, %v1892_v14  ;;  %v1883_v51 = vadd.f32 %v1882_v61, %v1881_v47 }
 0xb03   :  { %v1895_v62 = vrot.slane %v1894_v22, 1 }
 0xb05   :  { %v1896_v63 = vadd.f32 %v1895_v62, %v1894_v22 }
 0xb07   :  { %v1945_v0 = vadd.f32 %v1896_v63, %v1883_v51 }
 0xb09   :  { %v1946_v2 = vadd.f32 %v1945_v0, %v1939_v40 }
 0xb0b   :  { %v1953_v3 = vadd.f32 %v1951_v49, %v1946_v2 }
 0xb0d   :  { %1955 = vst.msk [vmem:[#allocation2] sm:$0x1] %vm1954_vm0, %v1953_v3 }
 0xb0e   :  { %2454 = shalt.err (!%p2451_p4)
}
 0xb0f   :  { %s2455_s27 = scalar_lea.hbm %s2922_s2, 16 }
 0xb10   :  { %p2456_p5 = scmp.ne.s32.totalorder %s2922_s2, %s2455_s27  ;;  %p2459_p6 = scmp.lt.u32.totalorder %s2455_s27, %s2922_s2 }
 0xb12   :  { %p2461_p7 = pnand %p2459_p6, %p2456_p5 }
 0xb14   :  { %2464 = shalt.err (!%p2461_p7)
}
 0xb15   :  { %1965 = dma.vmem_to_hbm [thread:$0]  %s1963_s22, 16, %s2922_s2, [#allocation3]  }
 0xb16   :  { %2465 = dma.done.wait [#allocation3], 16  }
 0xb17   :  { %2466 = vsyncadd [#allocation3], 4294967280 }
 0xb18   :  { %1969 = vsyncpa [#allocation3], 1 }

</bundles_post_ra>
